<compile_context>
chip_gen: v7x
topology: tpu7x:2x2x1
jax: 0.10.0
libtpu: 0.0.40
codegen_flags: <defaults>
</compile_context>

<pallas_src>
import functools

import jax
import jax.numpy as jnp
from jax.experimental import pallas as pl
from jax.experimental.pallas import tpu as pltpu


def _layernorm(x, gamma, beta, eps=1e-5):
    mu = jnp.mean(x, axis=-1, keepdims=True)
    var = jnp.mean((x - mu) ** 2, axis=-1, keepdims=True)
    return (x - mu) * jax.lax.rsqrt(var + eps) * gamma + beta


# ----------------------------------------------------------------------------
# fused kernel: grid = (B, L); activations live in VMEM scratch across layers
# ----------------------------------------------------------------------------
def _reward_fwd_kernel(n_heads, N, T, use_bf16,
                       lens_ref,                                   # scalar prefetch
                       img_ref, lang_ref, visw_ref, langw_ref, pvec_ref,
                       wqkv_ref, bqkv_ref, wo_ref, w1_ref, b1_ref, w2_ref,
                       lvec_ref,
                       fln_ref, fw1_ref, fb1_ref, fw2_ref, fb2_ref,
                       o_ref,
                       x_vmem, mask_vmem, attn_vmem):
    b = pl.program_id(0)
    l = pl.program_id(1)
    n_layers = pl.num_programs(1)
    S, D = attn_vmem.shape
    H = n_heads
    dh = D // H
    Ev = visw_ref.shape[0]

    mm_dt = jnp.bfloat16 if use_bf16 else jnp.float32

    def mm(a, w):
        return jnp.dot(a.astype(mm_dt), w.astype(mm_dt),
                       preferred_element_type=jnp.float32)

    # --- stage 0 (l == 0): projections, token assembly, key-padding bias ---
    @pl.when(l == 0)
    def _assemble():
        img = img_ref[0].reshape(N * T, Ev)                        # (N*T, Ev)
        vis = mm(img, visw_ref[...]) + pvec_ref[0:1, :]            # + visual_b
        vis = vis.reshape(N, T, D)
        t_iota = jax.lax.broadcasted_iota(jnp.int32, (N, T, 1), 1)
        first_pos = pvec_ref[2:3, :].reshape(1, 1, D)
        vis = vis + jnp.where(t_iota == 0, first_pos, 0.0)         # first_pos @ t=0
        lang = mm(lang_ref[0], langw_ref[...]) + pvec_ref[1:2, :]  # (1, D)
        x_vmem[:, 0:T, :] = vis
        x_vmem[:, T:T + 1, :] = jnp.broadcast_to(lang.reshape(1, 1, D), (N, 1, D))

        # additive key-padding bias with the SAME key ordering as the PyTorch
        # module: keys [0, N*T) are visual (masked iff t >= length), keys
        # [N*T, S) are lang tokens (never masked).
        length = lens_ref[b]
        t2 = jax.lax.broadcasted_iota(jnp.int32, (N, T), 1)
        vis_bias = jnp.where(t2 >= length, -1e9, 0.0).astype(jnp.float32)
        mask_vmem[:, 0:N * T] = vis_bias.reshape(1, N * T)
        mask_vmem[:, N * T:S] = jnp.zeros((1, S - N * T), jnp.float32)

    # --- one post-norm TransformerEncoderLayer (runs for every l) ---
    x = x_vmem[...].reshape(S, D)
    bias = mask_vmem[...]                                          # (1, S)

    lvec = lvec_ref[0]                                             # (6, D) slab
    qkv = mm(x, wqkv_ref[0]) + bqkv_ref[0]                         # fused QKV (S, 3D)
    q = qkv[:, 0:D] * (1.0 / float(dh) ** 0.5)                     # scale folded into q
    k = qkv[:, D:2 * D]
    v = qkv[:, 2 * D:3 * D]

    for h in range(H):                                             # static unroll
        qh = q[:, h * dh:(h + 1) * dh]
        kh = k[:, h * dh:(h + 1) * dh]
        vh = v[:, h * dh:(h + 1) * dh]
        s = jnp.dot(qh, kh.T, preferred_element_type=jnp.float32) + bias
        s = s - jnp.max(s, axis=-1, keepdims=True)
        p = jnp.exp(s)
        p = p * pl.reciprocal(jnp.sum(p, axis=-1, keepdims=True), approx=True)
        attn_vmem[:, h * dh:(h + 1) * dh] = jnp.dot(               # scratch slice,
            p, vh, preferred_element_type=jnp.float32)             # no concatenate

    attn = mm(attn_vmem[...], wo_ref[0]) + lvec[0:1, :]            # + b_o
    x1 = _layernorm(x + attn, lvec[2:3, :], lvec[3:4, :])          # LN1 (post-norm)
    ff = jnp.maximum(mm(x1, w1_ref[0]) + b1_ref[0], 0.0)           # ReLU FFN
    ff = mm(ff, w2_ref[0]) + lvec[1:2, :]                          # + b_2
    x2 = _layernorm(x1 + ff, lvec[4:5, :], lvec[5:6, :])           # LN2
    x_vmem[...] = x2.reshape(N, T + 1, D)                          # stays in VMEM

    # --- fusion head + sigmoid (after the last layer) ---
    @pl.when(l == n_layers - 1)
    def _head():
        if N == 1:
            hh = x2[0:T, :]                                        # (T, N*D)
        else:
            hh = jnp.transpose(x2.reshape(N, T + 1, D)[:, 0:T, :],
                               (1, 0, 2)).reshape(T, N * D)
        hh = _layernorm(hh, fln_ref[0:1, :], fln_ref[1:2, :])
        h1 = jnp.maximum(mm(hh, fw1_ref[...]) + fb1_ref[...], 0.0)
        r = mm(h1, fw2_ref[...]) + fb2_ref[...]                    # (T, 1)
        o_ref[...] = jax.nn.sigmoid(r).reshape(1, T, 1)


# ----------------------------------------------------------------------------
# wrapper: one pallas_call for the entire forward pass
# ----------------------------------------------------------------------------
def reward_transformer_forward(img_seq, lang_emb, lengths, params, *,
                               n_heads, use_bf16_matmul=False):
    B, N, T, Ev = img_seq.shape
    Et = lang_emb.shape[-1]
    D = params["visual_proj_w"].shape[1]
    L = params["w_qkv"].shape[0]
    assert D % n_heads == 0
    S = N * (T + 1)
    ND = N * D
    F = params["w1"].shape[-1]

    img_seq = img_seq.astype(jnp.float32)
    lang3 = lang_emb.astype(jnp.float32).reshape(B, 1, Et)
    lengths = lengths.astype(jnp.int32)

    kernel = functools.partial(_reward_fwd_kernel, n_heads, N, T,
                               use_bf16_matmul)

    def const(shape):
        n = len(shape)
        return pl.BlockSpec(shape, lambda bb, ll, lens: (0,) * n)

    def per_layer(shape):
        n = len(shape)
        return pl.BlockSpec(shape, lambda bb, ll, lens: (ll,) + (0,) * (n - 1))

    in_specs = [
        pl.BlockSpec((1, N, T, Ev), lambda bb, ll, lens: (bb, 0, 0, 0)),  # img
        pl.BlockSpec((1, 1, Et), lambda bb, ll, lens: (bb, 0, 0)),        # lang
        const((Ev, D)),                # visual_proj_w
        const((Et, D)),                # lang_proj_w
        const((3, D)),                 # [visual_b, lang_b, first_pos]
        per_layer((1, D, 3 * D)),      # fused QKV weight (streamed per layer)
        per_layer((1, 1, 3 * D)),      # fused QKV bias
        per_layer((1, D, D)),          # W_o
        per_layer((1, D, F)),          # W_1
        per_layer((1, 1, F)),          # b_1
        per_layer((1, F, D)),          # W_2
        per_layer((1, 6, D)),          # [b_o, b_2, ln1_g, ln1_b, ln2_g, ln2_b]
        const((2, ND)),                # fusion LN gamma/beta
        const((ND, D)),                # fusion W1
        const((1, D)),                 # fusion b1
        const((D, 1)),                 # fusion W2
        const((1, 1)),                 # fusion b2
    ]
    out_spec = pl.BlockSpec((1, T, 1), lambda bb, ll, lens: (bb, 0, 0))

    grid_spec = pltpu.PrefetchScalarGridSpec(
        num_scalar_prefetch=1,
        grid=(B, L),
        in_specs=in_specs,
        out_specs=out_spec,
        scratch_shapes=[
            pltpu.VMEM((N, T + 1, D), jnp.float32),   # resident activations
            pltpu.VMEM((1, S), jnp.float32),          # key-padding bias
            pltpu.VMEM((S, D), jnp.float32),          # per-head attention out
        ],
    )

    args = (lengths, img_seq, lang3,
            params["visual_proj_w"], params["lang_proj_w"], params["proj_vecs"],
            params["w_qkv"], params["b_qkv"], params["w_o"],
            params["w1"], params["b1"], params["w2"], params["layer_vecs"],
            params["f_ln"], params["f_w1"], params["f_b1"],
            params["f_w2"], params["f_b2"])

    flops_layer = 2 * S * 3 * D * D + 4 * S * S * D + 2 * S * D * D + 4 * S * D * F
    flops = B * (2 * N * T * Ev * D + 2 * Et * D + L * flops_layer
                 + 2 * T * ND * D + 2 * T * D)
    transc = B * (L * (n_heads * S * S + 2 * S) + 2 * T)
    bytes_acc = sum(int(a.size) * a.dtype.itemsize for a in args) + B * T * 4

    out = pl.pallas_call(
        kernel,
        out_shape=jax.ShapeDtypeStruct((B, T, 1), jnp.float32),
        grid_spec=grid_spec,
        compiler_params=pltpu.CompilerParams(
            dimension_semantics=("parallel", "arbitrary"),
            vmem_limit_bytes=32 * 1024 * 1024),
        cost_estimate=pl.CostEstimate(flops=int(flops),
                                      transcendentals=int(transc),
                                      bytes_accessed=int(bytes_acc)),
    )(*args)
    return out.reshape(B, T)


# ----------------------------------------------------------------------------
# deterministic parameter construction (shapes from the module's __init__)
# ----------------------------------------------------------------------------
def make_params(key, d_model, vis_emb_dim, text_emb_dim, n_layers, num_cameras):
    D = d_model
    F = 4 * D
    ND = D * num_cameras
    keys = iter(jax.random.split(key, 16 + 8 * n_layers))

    def w(shape, scale=0.05):
        return (scale * jax.random.normal(next(keys), shape)).astype(jnp.float32)

    ones = lambda s: jnp.ones(s, jnp.float32)
    zeros = lambda s: jnp.zeros(s, jnp.float32)

    wqkv, bqkv, wo, w1, b1, w2, lvecs = [], [], [], [], [], [], []
    for _ in range(n_layers):
        wqkv.append(w((D, 3 * D)))
        bqkv.append(w((1, 3 * D)))
        wo.append(w((D, D)))
        w1.append(w((D, F)))
        b1.append(w((1, F)))
        w2.append(w((F, D)))
        # rows: [b_o, b_2, ln1_gamma, ln1_beta, ln2_gamma, ln2_beta]
        lvecs.append(jnp.concatenate(
            [w((1, D)), w((1, D)), ones((1, D)), zeros((1, D)),
             ones((1, D)), zeros((1, D))], axis=0))

    return {
        "visual_proj_w": w((vis_emb_dim, D)),
        "lang_proj_w": w((text_emb_dim, D)),
        # rows: [visual_b, lang_b, first_pos]; first_pos random (torch init is
        # zeros) so the add path is exercised.
        "proj_vecs": jnp.concatenate([w((1, D)), w((1, D)), w((1, D))], axis=0),
        "w_qkv": jnp.stack(wqkv), "b_qkv": jnp.stack(bqkv),
        "w_o": jnp.stack(wo),
        "w1": jnp.stack(w1), "b1": jnp.stack(b1),
        "w2": jnp.stack(w2),
        "layer_vecs": jnp.stack(lvecs),
        "f_ln": jnp.concatenate([ones((1, ND)), zeros((1, ND))], axis=0),
        "f_w1": w((ND, D)), "f_b1": w((1, D)),
        "f_w2": w((D, 1)), "f_b2": w((1, 1)),
    }


if __name__ == "__main__":
    # TODO(synk): dropout layers are treated as identity (eval-mode semantics).
    B, N, T = 2, 1, 8
    D, Ev, Et = 32, 64, 48
    n_layers, n_heads = 2, 4

    key = jax.random.PRNGKey(0)
    k1, k2, k3 = jax.random.split(key, 3)
    img_seq = jax.random.normal(k1, (B, N, T, Ev), dtype=jnp.float32)
    lang_emb = jax.random.normal(k2, (B, Et), dtype=jnp.float32)
    lengths = jnp.array([5, 8], dtype=jnp.int32)

    params = make_params(k3, D, Ev, Et, n_layers, N)

    fwd = jax.jit(functools.partial(reward_transformer_forward, n_heads=n_heads))
    r = fwd(img_seq, lang_emb, lengths, params)
    r = jax.block_until_ready(r)
    assert r.shape == (B, T)
    assert bool(jnp.all(jnp.isfinite(r)))
    print("KERNEL_OK")
</pallas_src>

<mosaic_0001>
module attributes {stable_mosaic.version = 11 : i64} {
  func.func @_reward_fwd_kernel(%arg0: i32, %arg1: i32, %arg2: memref<2xi32, #tpu.memory_space<smem>>, %arg3: memref<1x1x8x64xf32, #tpu.memory_space<vmem>>, %arg4: memref<1x1x48xf32, #tpu.memory_space<vmem>>, %arg5: memref<64x32xf32, #tpu.memory_space<vmem>>, %arg6: memref<48x32xf32, #tpu.memory_space<vmem>>, %arg7: memref<3x32xf32, #tpu.memory_space<vmem>>, %arg8: memref<1x32x96xf32, #tpu.memory_space<vmem>>, %arg9: memref<1x1x96xf32, #tpu.memory_space<vmem>>, %arg10: memref<1x32x32xf32, #tpu.memory_space<vmem>>, %arg11: memref<1x32x128xf32, #tpu.memory_space<vmem>>, %arg12: memref<1x1x128xf32, #tpu.memory_space<vmem>>, %arg13: memref<1x128x32xf32, #tpu.memory_space<vmem>>, %arg14: memref<1x6x32xf32, #tpu.memory_space<vmem>>, %arg15: memref<2x32xf32, #tpu.memory_space<vmem>>, %arg16: memref<32x32xf32, #tpu.memory_space<vmem>>, %arg17: memref<1x32xf32, #tpu.memory_space<vmem>>, %arg18: memref<32x1xf32, #tpu.memory_space<vmem>>, %arg19: memref<1x1xf32, #tpu.memory_space<vmem>>, %arg20: memref<1x8x1xf32, #tpu.memory_space<vmem>>, %arg21: memref<1x9x32xf32, #tpu.memory_space<vmem>>, %arg22: memref<1x9xf32, #tpu.memory_space<vmem>>, %arg23: memref<9x32xf32, #tpu.memory_space<vmem>>) attributes {dimension_semantics = [#tpu.dimension_semantics<parallel>, #tpu.dimension_semantics<arbitrary>], iteration_bounds = array<i64: 2, 2>, scalar_prefetch = 1 : i64, scratch_operands = 3 : i64, tpu.core_type = #tpu.core_type<tc>, window_params = [{transform_indices = @transform_0, window_bounds = array<i64: 1, 1, 8, 64>}, {transform_indices = @transform_1, window_bounds = array<i64: 1, 1, 48>}, {pipeline_mode = #tpu.pipeline_mode<synchronous>, transform_indices = @transform_2, window_bounds = array<i64: 64, 32>}, {pipeline_mode = #tpu.pipeline_mode<synchronous>, transform_indices = @transform_3, window_bounds = array<i64: 48, 32>}, {pipeline_mode = #tpu.pipeline_mode<synchronous>, transform_indices = @transform_4, window_bounds = array<i64: 3, 32>}, {transform_indices = @transform_5, window_bounds = array<i64: 1, 32, 96>}, {transform_indices = @transform_6, window_bounds = array<i64: 1, 1, 96>}, {transform_indices = @transform_7, window_bounds = array<i64: 1, 32, 32>}, {transform_indices = @transform_8, window_bounds = array<i64: 1, 32, 128>}, {transform_indices = @transform_9, window_bounds = array<i64: 1, 1, 128>}, {transform_indices = @transform_10, window_bounds = array<i64: 1, 128, 32>}, {transform_indices = @transform_11, window_bounds = array<i64: 1, 6, 32>}, {pipeline_mode = #tpu.pipeline_mode<synchronous>, transform_indices = @transform_12, window_bounds = array<i64: 2, 32>}, {pipeline_mode = #tpu.pipeline_mode<synchronous>, transform_indices = @transform_13, window_bounds = array<i64: 32, 32>}, {pipeline_mode = #tpu.pipeline_mode<synchronous>, transform_indices = @transform_14, window_bounds = array<i64: 1, 32>}, {pipeline_mode = #tpu.pipeline_mode<synchronous>, transform_indices = @transform_15, window_bounds = array<i64: 32, 1>}, {pipeline_mode = #tpu.pipeline_mode<synchronous>, transform_indices = @transform_16, window_bounds = array<i64: 1, 1>}, {transform_indices = @transform_17, window_bounds = array<i64: 1, 8, 1>}]} {
    %c0_i32 = arith.constant 0 : i32
    %0 = arith.cmpi eq, %arg1, %c0_i32 : i32
    %1 = arith.extui %0 : i1 to i32
    %c0_i32_0 = arith.constant 0 : i32
    %2 = arith.cmpi ne, %1, %c0_i32_0 : i32
    scf.if %2 {
      %c0_68 = arith.constant 0 : index
      %c0_69 = arith.constant 0 : index
      %c0_70 = arith.constant 0 : index
      %c0_71 = arith.constant 0 : index
      %173 = vector.load %arg3[%c0_68, %c0_69, %c0_70, %c0_71] : memref<1x1x8x64xf32, #tpu.memory_space<vmem>>, vector<1x1x8x64xf32>
      %174 = vector.shape_cast %173 : vector<1x1x8x64xf32> to vector<1x8x64xf32>
      %175 = vector.shape_cast %174 : vector<1x8x64xf32> to vector<8x64xf32>
      %c0_72 = arith.constant 0 : index
      %c0_73 = arith.constant 0 : index
      %176 = vector.load %arg5[%c0_72, %c0_73] : memref<64x32xf32, #tpu.memory_space<vmem>>, vector<64x32xf32>
      %cst_74 = arith.constant dense<0.000000e+00> : vector<8x32xf32>
      %177 = tpu.matmul %175, %176, %cst_74 {dimension_numbers = #tpu.dot_dimension_numbers<[1], [0], [0], [1], [0, 0, 1, 1], [], []>} : vector<8x64xf32>, vector<64x32xf32>, vector<8x32xf32> -> vector<8x32xf32>
      %c0_75 = arith.constant 0 : index
      %c0_76 = arith.constant 0 : index
      %178 = vector.load %arg7[%c0_75, %c0_76] : memref<3x32xf32, #tpu.memory_space<vmem>>, vector<1x32xf32>
      %179 = vector.broadcast %178 : vector<1x32xf32> to vector<8x32xf32>
      %180 = arith.addf %177, %179 : vector<8x32xf32>
      %181 = vector.shape_cast %180 : vector<8x32xf32> to vector<1x8x32xf32>
      %182 = tpu.iota {dimensions = array<i32: 1>} : vector<1x8x1xi32>
      %c2 = arith.constant 2 : index
      %c0_77 = arith.constant 0 : index
      %183 = vector.load %arg7[%c2, %c0_77] : memref<3x32xf32, #tpu.memory_space<vmem>>, vector<1x32xf32>
      %184 = vector.shape_cast %183 : vector<1x32xf32> to vector<1x1x32xf32>
      %c0_i32_78 = arith.constant 0 : i32
      %185 = vector.broadcast %c0_i32_78 : i32 to vector<1x8x1xi32>
      %186 = arith.cmpi eq, %182, %185 : vector<1x8x1xi32>
      %cst_79 = arith.constant 0.000000e+00 : f32
      %187 = vector.shape_cast %186 : vector<1x8x1xi1> to vector<1x8x1xi1>
      %188 = vector.broadcast %187 : vector<1x8x1xi1> to vector<1x8x32xi1>
      %189 = vector.shape_cast %184 : vector<1x1x32xf32> to vector<1x1x32xf32>
      %190 = vector.broadcast %189 : vector<1x1x32xf32> to vector<1x8x32xf32>
      %191 = vector.broadcast %cst_79 : f32 to vector<1x8x32xf32>
      %192 = arith.select %188, %190, %191 : vector<1x8x32xi1>, vector<1x8x32xf32>
      %193 = arith.addf %181, %192 : vector<1x8x32xf32>
      %c0_80 = arith.constant 0 : index
      %c0_81 = arith.constant 0 : index
      %c0_82 = arith.constant 0 : index
      %194 = vector.load %arg4[%c0_80, %c0_81, %c0_82] : memref<1x1x48xf32, #tpu.memory_space<vmem>>, vector<1x1x48xf32>
      %195 = vector.shape_cast %194 : vector<1x1x48xf32> to vector<1x48xf32>
      %c0_83 = arith.constant 0 : index
      %c0_84 = arith.constant 0 : index
      %196 = vector.load %arg6[%c0_83, %c0_84] : memref<48x32xf32, #tpu.memory_space<vmem>>, vector<48x32xf32>
      %cst_85 = arith.constant dense<0.000000e+00> : vector<1x32xf32>
      %197 = tpu.matmul %195, %196, %cst_85 {dimension_numbers = #tpu.dot_dimension_numbers<[1], [0], [0], [1], [0, 0, 1, 1], [], []>} : vector<1x48xf32>, vector<48x32xf32>, vector<1x32xf32> -> vector<1x32xf32>
      %c1 = arith.constant 1 : index
      %c0_86 = arith.constant 0 : index
      %198 = vector.load %arg7[%c1, %c0_86] : memref<3x32xf32, #tpu.memory_space<vmem>>, vector<1x32xf32>
      %199 = arith.addf %197, %198 : vector<1x32xf32>
      %c0_87 = arith.constant 0 : index
      %c0_88 = arith.constant 0 : index
      %c0_89 = arith.constant 0 : index
      %200 = vector.load %arg21[%c0_87, %c0_88, %c0_89] : memref<1x9x32xf32, #tpu.memory_space<vmem>>, vector<1x8x32xf32>
      tpu.vector_store %arg21[%c0_87, %c0_88, %c0_89], %193 {strides = array<i32>} : memref<1x9x32xf32, #tpu.memory_space<vmem>>, vector<1x8x32xf32>,
      %201 = vector.shape_cast %199 : vector<1x32xf32> to vector<1x1x32xf32>
      %c0_90 = arith.constant 0 : index
      %c8_91 = arith.constant 8 : index
      %c0_92 = arith.constant 0 : index
      %202 = vector.load %arg21[%c0_90, %c8_91, %c0_92] : memref<1x9x32xf32, #tpu.memory_space<vmem>>, vector<1x1x32xf32>
      tpu.vector_store %arg21[%c0_90, %c8_91, %c0_92], %201 {strides = array<i32>} : memref<1x9x32xf32, #tpu.memory_space<vmem>>, vector<1x1x32xf32>,
      %203 = arith.index_cast %arg0 : i32 to index
      %204 = memref.load %arg2[%203] : memref<2xi32, #tpu.memory_space<smem>>
      %205 = tpu.iota {dimensions = array<i32: 1>} : vector<1x8xi32>
      %206 = vector.broadcast %204 : i32 to vector<1x8xi32>
      %207 = arith.cmpi sge, %205, %206 : vector<1x8xi32>
      %cst_93 = arith.constant -1.000000e+09 : f32
      %cst_94 = arith.constant 0.000000e+00 : f32
      %208 = vector.broadcast %cst_93 : f32 to vector<1x8xf32>
      %209 = vector.broadcast %cst_94 : f32 to vector<1x8xf32>
      %210 = arith.select %207, %208, %209 : vector<1x8xi1>, vector<1x8xf32>
      %c0_95 = arith.constant 0 : index
      %c0_96 = arith.constant 0 : index
      %211 = vector.load %arg22[%c0_95, %c0_96] : memref<1x9xf32, #tpu.memory_space<vmem>>, vector<1x8xf32>
      tpu.vector_store %arg22[%c0_95, %c0_96], %210 {strides = array<i32>} : memref<1x9xf32, #tpu.memory_space<vmem>>, vector<1x8xf32>,
      %cst_97 = arith.constant 0.000000e+00 : f32
      %212 = vector.broadcast %cst_97 : f32 to vector<1x1xf32>
      %c0_98 = arith.constant 0 : index
      %c8_99 = arith.constant 8 : index
      %213 = vector.load %arg22[%c0_98, %c8_99] : memref<1x9xf32, #tpu.memory_space<vmem>>, vector<1x1xf32>
      tpu.vector_store %arg22[%c0_98, %c8_99], %212 {strides = array<i32>} : memref<1x9xf32, #tpu.memory_space<vmem>>, vector<1x1xf32>,
    } else {
    }
    %c0 = arith.constant 0 : index
    %c0_1 = arith.constant 0 : index
    %c0_2 = arith.constant 0 : index
    %3 = vector.load %arg21[%c0, %c0_1, %c0_2] : memref<1x9x32xf32, #tpu.memory_space<vmem>>, vector<1x9x32xf32>
    %4 = vector.shape_cast %3 : vector<1x9x32xf32> to vector<9x32xf32>
    %c0_3 = arith.constant 0 : index
    %c0_4 = arith.constant 0 : index
    %5 = vector.load %arg22[%c0_3, %c0_4] : memref<1x9xf32, #tpu.memory_space<vmem>>, vector<1x9xf32>
    %c0_5 = arith.constant 0 : index
    %c0_6 = arith.constant 0 : index
    %c0_7 = arith.constant 0 : index
    %6 = vector.load %arg14[%c0_5, %c0_6, %c0_7] : memref<1x6x32xf32, #tpu.memory_space<vmem>>, vector<1x6x32xf32>
    %7 = vector.shape_cast %6 : vector<1x6x32xf32> to vector<6x32xf32>
    %c0_8 = arith.constant 0 : index
    %c0_9 = arith.constant 0 : index
    %c0_10 = arith.constant 0 : index
    %8 = vector.load %arg8[%c0_8, %c0_9, %c0_10] : memref<1x32x96xf32, #tpu.memory_space<vmem>>, vector<1x32x96xf32>
    %9 = vector.shape_cast %8 : vector<1x32x96xf32> to vector<32x96xf32>
    %cst = arith.constant dense<0.000000e+00> : vector<9x96xf32>
    %10 = tpu.matmul %4, %9, %cst {dimension_numbers = #tpu.dot_dimension_numbers<[1], [0], [0], [1], [0, 0, 1, 1], [], []>} : vector<9x32xf32>, vector<32x96xf32>, vector<9x96xf32> -> vector<9x96xf32>
    %c0_11 = arith.constant 0 : index
    %c0_12 = arith.constant 0 : index
    %c0_13 = arith.constant 0 : index
    %11 = vector.load %arg9[%c0_11, %c0_12, %c0_13] : memref<1x1x96xf32, #tpu.memory_space<vmem>>, vector<1x1x96xf32>
    %12 = vector.shape_cast %11 : vector<1x1x96xf32> to vector<1x96xf32>
    %13 = vector.broadcast %12 : vector<1x96xf32> to vector<9x96xf32>
    %14 = arith.addf %10, %13 : vector<9x96xf32>
    %15 = vector.extract_strided_slice %14 {offsets = [0, 0], sizes = [9, 32], strides = [1, 1]} : vector<9x96xf32> to vector<9x32xf32>
    %cst_14 = arith.constant 0.353553385 : f32
    %16 = vector.broadcast %cst_14 : f32 to vector<9x32xf32>
    %17 = arith.mulf %15, %16 : vector<9x32xf32>
    %18 = vector.extract_strided_slice %14 {offsets = [0, 32], sizes = [9, 32], strides = [1, 1]} : vector<9x96xf32> to vector<9x32xf32>
    %19 = vector.extract_strided_slice %14 {offsets = [0, 64], sizes = [9, 32], strides = [1, 1]} : vector<9x96xf32> to vector<9x32xf32>
    %20 = vector.extract_strided_slice %17 {offsets = [0, 0], sizes = [9, 8], strides = [1, 1]} : vector<9x32xf32> to vector<9x8xf32>
    %21 = vector.extract_strided_slice %18 {offsets = [0, 0], sizes = [9, 8], strides = [1, 1]} : vector<9x32xf32> to vector<9x8xf32>
    %22 = vector.extract_strided_slice %19 {offsets = [0, 0], sizes = [9, 8], strides = [1, 1]} : vector<9x32xf32> to vector<9x8xf32>
    %23 = tpu.transpose %21, [1, 0] : vector<9x8xf32> -> vector<8x9xf32>
    %cst_15 = arith.constant dense<0.000000e+00> : vector<9x9xf32>
    %24 = tpu.matmul %20, %23, %cst_15 {dimension_numbers = #tpu.dot_dimension_numbers<[1], [0], [0], [1], [0, 0, 1, 1], [], []>} : vector<9x8xf32>, vector<8x9xf32>, vector<9x9xf32> -> vector<9x9xf32>
    %25 = vector.broadcast %5 : vector<1x9xf32> to vector<9x9xf32>
    %26 = arith.addf %24, %25 : vector<9x9xf32>
    %cst_16 = arith.constant dense<0xFF800000> : vector<9xf32>
    %27 = vector.multi_reduction <maximumf>, %26, %cst_16 [1] : vector<9x9xf32> to vector<9xf32>
    %28 = vector.shape_cast %27 : vector<9xf32> to vector<9x1xf32>
    %29 = vector.broadcast %28 : vector<9x1xf32> to vector<9x9xf32>
    %30 = arith.subf %26, %29 : vector<9x9xf32>
    %31 = math.exp %30 : vector<9x9xf32>
    %cst_17 = arith.constant dense<0.000000e+00> : vector<9xf32>
    %32 = vector.multi_reduction <add>, %31, %cst_17 [1] : vector<9x9xf32> to vector<9xf32>
    %33 = vector.shape_cast %32 : vector<9xf32> to vector<9x1xf32>
    %34 = tpu.reciprocal %33 {approx = true} : vector<9x1xf32> -> vector<9x1xf32>
    %35 = vector.broadcast %34 : vector<9x1xf32> to vector<9x9xf32>
    %36 = arith.mulf %31, %35 : vector<9x9xf32>
    %cst_18 = arith.constant dense<0.000000e+00> : vector<9x8xf32>
    %37 = tpu.matmul %36, %22, %cst_18 {dimension_numbers = #tpu.dot_dimension_numbers<[1], [0], [0], [1], [0, 0, 1, 1], [], []>} : vector<9x9xf32>, vector<9x8xf32>, vector<9x8xf32> -> vector<9x8xf32>
    %c0_19 = arith.constant 0 : index
    %c0_20 = arith.constant 0 : index
    %38 = vector.load %arg23[%c0_19, %c0_20] : memref<9x32xf32, #tpu.memory_space<vmem>>, vector<9x8xf32>
    tpu.vector_store %arg23[%c0_19, %c0_20], %37 {strides = array<i32>} : memref<9x32xf32, #tpu.memory_space<vmem>>, vector<9x8xf32>,
    %39 = vector.extract_strided_slice %17 {offsets = [0, 8], sizes = [9, 8], strides = [1, 1]} : vector<9x32xf32> to vector<9x8xf32>
    %40 = vector.extract_strided_slice %18 {offsets = [0, 8], sizes = [9, 8], strides = [1, 1]} : vector<9x32xf32> to vector<9x8xf32>
    %41 = vector.extract_strided_slice %19 {offsets = [0, 8], sizes = [9, 8], strides = [1, 1]} : vector<9x32xf32> to vector<9x8xf32>
    %42 = tpu.transpose %40, [1, 0] : vector<9x8xf32> -> vector<8x9xf32>
    %cst_21 = arith.constant dense<0.000000e+00> : vector<9x9xf32>
    %43 = tpu.matmul %39, %42, %cst_21 {dimension_numbers = #tpu.dot_dimension_numbers<[1], [0], [0], [1], [0, 0, 1, 1], [], []>} : vector<9x8xf32>, vector<8x9xf32>, vector<9x9xf32> -> vector<9x9xf32>
    %44 = vector.broadcast %5 : vector<1x9xf32> to vector<9x9xf32>
    %45 = arith.addf %43, %44 : vector<9x9xf32>
    %cst_22 = arith.constant dense<0xFF800000> : vector<9xf32>
    %46 = vector.multi_reduction <maximumf>, %45, %cst_22 [1] : vector<9x9xf32> to vector<9xf32>
    %47 = vector.shape_cast %46 : vector<9xf32> to vector<9x1xf32>
    %48 = vector.broadcast %47 : vector<9x1xf32> to vector<9x9xf32>
    %49 = arith.subf %45, %48 : vector<9x9xf32>
    %50 = math.exp %49 : vector<9x9xf32>
    %cst_23 = arith.constant dense<0.000000e+00> : vector<9xf32>
    %51 = vector.multi_reduction <add>, %50, %cst_23 [1] : vector<9x9xf32> to vector<9xf32>
    %52 = vector.shape_cast %51 : vector<9xf32> to vector<9x1xf32>
    %53 = tpu.reciprocal %52 {approx = true} : vector<9x1xf32> -> vector<9x1xf32>
    %54 = vector.broadcast %53 : vector<9x1xf32> to vector<9x9xf32>
    %55 = arith.mulf %50, %54 : vector<9x9xf32>
    %cst_24 = arith.constant dense<0.000000e+00> : vector<9x8xf32>
    %56 = tpu.matmul %55, %41, %cst_24 {dimension_numbers = #tpu.dot_dimension_numbers<[1], [0], [0], [1], [0, 0, 1, 1], [], []>} : vector<9x9xf32>, vector<9x8xf32>, vector<9x8xf32> -> vector<9x8xf32>
    %c0_25 = arith.constant 0 : index
    %c8 = arith.constant 8 : index
    %57 = vector.load %arg23[%c0_25, %c8] : memref<9x32xf32, #tpu.memory_space<vmem>>, vector<9x8xf32>
    tpu.vector_store %arg23[%c0_25, %c8], %56 {strides = array<i32>} : memref<9x32xf32, #tpu.memory_space<vmem>>, vector<9x8xf32>,
    %58 = vector.extract_strided_slice %17 {offsets = [0, 16], sizes = [9, 8], strides = [1, 1]} : vector<9x32xf32> to vector<9x8xf32>
    %59 = vector.extract_strided_slice %18 {offsets = [0, 16], sizes = [9, 8], strides = [1, 1]} : vector<9x32xf32> to vector<9x8xf32>
    %60 = vector.extract_strided_slice %19 {offsets = [0, 16], sizes = [9, 8], strides = [1, 1]} : vector<9x32xf32> to vector<9x8xf32>
    %61 = tpu.transpose %59, [1, 0] : vector<9x8xf32> -> vector<8x9xf32>
    %cst_26 = arith.constant dense<0.000000e+00> : vector<9x9xf32>
    %62 = tpu.matmul %58, %61, %cst_26 {dimension_numbers = #tpu.dot_dimension_numbers<[1], [0], [0], [1], [0, 0, 1, 1], [], []>} : vector<9x8xf32>, vector<8x9xf32>, vector<9x9xf32> -> vector<9x9xf32>
    %63 = vector.broadcast %5 : vector<1x9xf32> to vector<9x9xf32>
    %64 = arith.addf %62, %63 : vector<9x9xf32>
    %cst_27 = arith.constant dense<0xFF800000> : vector<9xf32>
    %65 = vector.multi_reduction <maximumf>, %64, %cst_27 [1] : vector<9x9xf32> to vector<9xf32>
    %66 = vector.shape_cast %65 : vector<9xf32> to vector<9x1xf32>
    %67 = vector.broadcast %66 : vector<9x1xf32> to vector<9x9xf32>
    %68 = arith.subf %64, %67 : vector<9x9xf32>
    %69 = math.exp %68 : vector<9x9xf32>
    %cst_28 = arith.constant dense<0.000000e+00> : vector<9xf32>
    %70 = vector.multi_reduction <add>, %69, %cst_28 [1] : vector<9x9xf32> to vector<9xf32>
    %71 = vector.shape_cast %70 : vector<9xf32> to vector<9x1xf32>
    %72 = tpu.reciprocal %71 {approx = true} : vector<9x1xf32> -> vector<9x1xf32>
    %73 = vector.broadcast %72 : vector<9x1xf32> to vector<9x9xf32>
    %74 = arith.mulf %69, %73 : vector<9x9xf32>
    %cst_29 = arith.constant dense<0.000000e+00> : vector<9x8xf32>
    %75 = tpu.matmul %74, %60, %cst_29 {dimension_numbers = #tpu.dot_dimension_numbers<[1], [0], [0], [1], [0, 0, 1, 1], [], []>} : vector<9x9xf32>, vector<9x8xf32>, vector<9x8xf32> -> vector<9x8xf32>
    %c0_30 = arith.constant 0 : index
    %c16 = arith.constant 16 : index
    %76 = vector.load %arg23[%c0_30, %c16] : memref<9x32xf32, #tpu.memory_space<vmem>>, vector<9x8xf32>
    tpu.vector_store %arg23[%c0_30, %c16], %75 {strides = array<i32>} : memref<9x32xf32, #tpu.memory_space<vmem>>, vector<9x8xf32>,
    %77 = vector.extract_strided_slice %17 {offsets = [0, 24], sizes = [9, 8], strides = [1, 1]} : vector<9x32xf32> to vector<9x8xf32>
    %78 = vector.extract_strided_slice %18 {offsets = [0, 24], sizes = [9, 8], strides = [1, 1]} : vector<9x32xf32> to vector<9x8xf32>
    %79 = vector.extract_strided_slice %19 {offsets = [0, 24], sizes = [9, 8], strides = [1, 1]} : vector<9x32xf32> to vector<9x8xf32>
    %80 = tpu.transpose %78, [1, 0] : vector<9x8xf32> -> vector<8x9xf32>
    %cst_31 = arith.constant dense<0.000000e+00> : vector<9x9xf32>
    %81 = tpu.matmul %77, %80, %cst_31 {dimension_numbers = #tpu.dot_dimension_numbers<[1], [0], [0], [1], [0, 0, 1, 1], [], []>} : vector<9x8xf32>, vector<8x9xf32>, vector<9x9xf32> -> vector<9x9xf32>
    %82 = vector.broadcast %5 : vector<1x9xf32> to vector<9x9xf32>
    %83 = arith.addf %81, %82 : vector<9x9xf32>
    %cst_32 = arith.constant dense<0xFF800000> : vector<9xf32>
    %84 = vector.multi_reduction <maximumf>, %83, %cst_32 [1] : vector<9x9xf32> to vector<9xf32>
    %85 = vector.shape_cast %84 : vector<9xf32> to vector<9x1xf32>
    %86 = vector.broadcast %85 : vector<9x1xf32> to vector<9x9xf32>
    %87 = arith.subf %83, %86 : vector<9x9xf32>
    %88 = math.exp %87 : vector<9x9xf32>
    %cst_33 = arith.constant dense<0.000000e+00> : vector<9xf32>
    %89 = vector.multi_reduction <add>, %88, %cst_33 [1] : vector<9x9xf32> to vector<9xf32>
    %90 = vector.shape_cast %89 : vector<9xf32> to vector<9x1xf32>
    %91 = tpu.reciprocal %90 {approx = true} : vector<9x1xf32> -> vector<9x1xf32>
    %92 = vector.broadcast %91 : vector<9x1xf32> to vector<9x9xf32>
    %93 = arith.mulf %88, %92 : vector<9x9xf32>
    %cst_34 = arith.constant dense<0.000000e+00> : vector<9x8xf32>
    %94 = tpu.matmul %93, %79, %cst_34 {dimension_numbers = #tpu.dot_dimension_numbers<[1], [0], [0], [1], [0, 0, 1, 1], [], []>} : vector<9x9xf32>, vector<9x8xf32>, vector<9x8xf32> -> vector<9x8xf32>
    %c0_35 = arith.constant 0 : index
    %c24 = arith.constant 24 : index
    %95 = vector.load %arg23[%c0_35, %c24] : memref<9x32xf32, #tpu.memory_space<vmem>>, vector<9x8xf32>
    tpu.vector_store %arg23[%c0_35, %c24], %94 {strides = array<i32>} : memref<9x32xf32, #tpu.memory_space<vmem>>, vector<9x8xf32>,
    %c0_36 = arith.constant 0 : index
    %c0_37 = arith.constant 0 : index
    %96 = vector.load %arg23[%c0_36, %c0_37] : memref<9x32xf32, #tpu.memory_space<vmem>>, vector<9x32xf32>
    %c0_38 = arith.constant 0 : index
    %c0_39 = arith.constant 0 : index
    %c0_40 = arith.constant 0 : index
    %97 = vector.load %arg10[%c0_38, %c0_39, %c0_40] : memref<1x32x32xf32, #tpu.memory_space<vmem>>, vector<1x32x32xf32>
    %98 = vector.shape_cast %97 : vector<1x32x32xf32> to vector<32x32xf32>
    %cst_41 = arith.constant dense<0.000000e+00> : vector<9x32xf32>
    %99 = tpu.matmul %96, %98, %cst_41 {dimension_numbers = #tpu.dot_dimension_numbers<[1], [0], [0], [1], [0, 0, 1, 1], [], []>} : vector<9x32xf32>, vector<32x32xf32>, vector<9x32xf32> -> vector<9x32xf32>
    %100 = vector.extract_strided_slice %7 {offsets = [0, 0], sizes = [1, 32], strides = [1, 1]} : vector<6x32xf32> to vector<1x32xf32>
    %101 = vector.broadcast %100 : vector<1x32xf32> to vector<9x32xf32>
    %102 = arith.addf %99, %101 : vector<9x32xf32>
    %103 = arith.addf %4, %102 : vector<9x32xf32>
    %104 = vector.extract_strided_slice %7 {offsets = [2, 0], sizes = [1, 32], strides = [1, 1]} : vector<6x32xf32> to vector<1x32xf32>
    %105 = vector.extract_strided_slice %7 {offsets = [3, 0], sizes = [1, 32], strides = [1, 1]} : vector<6x32xf32> to vector<1x32xf32>
    %cst_42 = arith.constant dense<0.000000e+00> : vector<9xf32>
    %106 = vector.multi_reduction <add>, %103, %cst_42 [1] : vector<9x32xf32> to vector<9xf32>
    %107 = vector.shape_cast %106 : vector<9xf32> to vector<9x1xf32>
    %cst_43 = arith.constant 3.200000e+01 : f32
    %108 = vector.broadcast %cst_43 : f32 to vector<9x1xf32>
    %109 = arith.divf %107, %108 : vector<9x1xf32>
    %110 = vector.broadcast %109 : vector<9x1xf32> to vector<9x32xf32>
    %111 = arith.subf %103, %110 : vector<9x32xf32>
    %112 = arith.mulf %111, %111 : vector<9x32xf32>
    %cst_44 = arith.constant dense<0.000000e+00> : vector<9xf32>
    %113 = vector.multi_reduction <add>, %112, %cst_44 [1] : vector<9x32xf32> to vector<9xf32>
    %114 = vector.shape_cast %113 : vector<9xf32> to vector<9x1xf32>
    %cst_45 = arith.constant 3.200000e+01 : f32
    %115 = vector.broadcast %cst_45 : f32 to vector<9x1xf32>
    %116 = arith.divf %114, %115 : vector<9x1xf32>
    %117 = vector.broadcast %109 : vector<9x1xf32> to vector<9x32xf32>
    %118 = arith.subf %103, %117 : vector<9x32xf32>
    %cst_46 = arith.constant 9.99999974E-6 : f32
    %119 = vector.broadcast %cst_46 : f32 to vector<9x1xf32>
    %120 = arith.addf %116, %119 : vector<9x1xf32>
    %121 = math.rsqrt %120 : vector<9x1xf32>
    %122 = vector.broadcast %121 : vector<9x1xf32> to vector<9x32xf32>
    %123 = arith.mulf %118, %122 : vector<9x32xf32>
    %124 = vector.broadcast %104 : vector<1x32xf32> to vector<9x32xf32>
    %125 = arith.mulf %123, %124 : vector<9x32xf32>
    %126 = vector.broadcast %105 : vector<1x32xf32> to vector<9x32xf32>
    %127 = arith.addf %125, %126 : vector<9x32xf32>
    %c0_47 = arith.constant 0 : index
    %c0_48 = arith.constant 0 : index
    %c0_49 = arith.constant 0 : index
    %128 = vector.load %arg11[%c0_47, %c0_48, %c0_49] : memref<1x32x128xf32, #tpu.memory_space<vmem>>, vector<1x32x128xf32>
    %129 = vector.shape_cast %128 : vector<1x32x128xf32> to vector<32x128xf32>
    %cst_50 = arith.constant dense<0.000000e+00> : vector<9x128xf32>
    %130 = tpu.matmul %127, %129, %cst_50 {dimension_numbers = #tpu.dot_dimension_numbers<[1], [0], [0], [1], [0, 0, 1, 1], [], []>} : vector<9x32xf32>, vector<32x128xf32>, vector<9x128xf32> -> vector<9x128xf32>
    %c0_51 = arith.constant 0 : index
    %c0_52 = arith.constant 0 : index
    %c0_53 = arith.constant 0 : index
    %131 = vector.load %arg12[%c0_51, %c0_52, %c0_53] : memref<1x1x128xf32, #tpu.memory_space<vmem>>, vector<1x1x128xf32>
    %132 = vector.shape_cast %131 : vector<1x1x128xf32> to vector<1x128xf32>
    %133 = vector.broadcast %132 : vector<1x128xf32> to vector<9x128xf32>
    %134 = arith.addf %130, %133 : vector<9x128xf32>
    %cst_54 = arith.constant 0.000000e+00 : f32
    %135 = vector.broadcast %cst_54 : f32 to vector<9x128xf32>
    %136 = arith.maximumf %134, %135 : vector<9x128xf32>
    %c0_55 = arith.constant 0 : index
    %c0_56 = arith.constant 0 : index
    %c0_57 = arith.constant 0 : index
    %137 = vector.load %arg13[%c0_55, %c0_56, %c0_57] : memref<1x128x32xf32, #tpu.memory_space<vmem>>, vector<1x128x32xf32>
    %138 = vector.shape_cast %137 : vector<1x128x32xf32> to vector<128x32xf32>
    %cst_58 = arith.constant dense<0.000000e+00> : vector<9x32xf32>
    %139 = tpu.matmul %136, %138, %cst_58 {dimension_numbers = #tpu.dot_dimension_numbers<[1], [0], [0], [1], [0, 0, 1, 1], [], []>} : vector<9x128xf32>, vector<128x32xf32>, vector<9x32xf32> -> vector<9x32xf32>
    %140 = vector.extract_strided_slice %7 {offsets = [1, 0], sizes = [1, 32], strides = [1, 1]} : vector<6x32xf32> to vector<1x32xf32>
    %141 = vector.broadcast %140 : vector<1x32xf32> to vector<9x32xf32>
    %142 = arith.addf %139, %141 : vector<9x32xf32>
    %143 = arith.addf %127, %142 : vector<9x32xf32>
    %144 = vector.extract_strided_slice %7 {offsets = [4, 0], sizes = [1, 32], strides = [1, 1]} : vector<6x32xf32> to vector<1x32xf32>
    %145 = vector.extract_strided_slice %7 {offsets = [5, 0], sizes = [1, 32], strides = [1, 1]} : vector<6x32xf32> to vector<1x32xf32>
    %cst_59 = arith.constant dense<0.000000e+00> : vector<9xf32>
    %146 = vector.multi_reduction <add>, %143, %cst_59 [1] : vector<9x32xf32> to vector<9xf32>
    %147 = vector.shape_cast %146 : vector<9xf32> to vector<9x1xf32>
    %cst_60 = arith.constant 3.200000e+01 : f32
    %148 = vector.broadcast %cst_60 : f32 to vector<9x1xf32>
    %149 = arith.divf %147, %148 : vector<9x1xf32>
    %150 = vector.broadcast %149 : vector<9x1xf32> to vector<9x32xf32>
    %151 = arith.subf %143, %150 : vector<9x32xf32>
    %152 = arith.mulf %151, %151 : vector<9x32xf32>
    %cst_61 = arith.constant dense<0.000000e+00> : vector<9xf32>
    %153 = vector.multi_reduction <add>, %152, %cst_61 [1] : vector<9x32xf32> to vector<9xf32>
    %154 = vector.shape_cast %153 : vector<9xf32> to vector<9x1xf32>
    %cst_62 = arith.constant 3.200000e+01 : f32
    %155 = vector.broadcast %cst_62 : f32 to vector<9x1xf32>
    %156 = arith.divf %154, %155 : vector<9x1xf32>
    %157 = vector.broadcast %149 : vector<9x1xf32> to vector<9x32xf32>
    %158 = arith.subf %143, %157 : vector<9x32xf32>
    %cst_63 = arith.constant 9.99999974E-6 : f32
    %159 = vector.broadcast %cst_63 : f32 to vector<9x1xf32>
    %160 = arith.addf %156, %159 : vector<9x1xf32>
    %161 = math.rsqrt %160 : vector<9x1xf32>
    %162 = vector.broadcast %161 : vector<9x1xf32> to vector<9x32xf32>
    %163 = arith.mulf %158, %162 : vector<9x32xf32>
    %164 = vector.broadcast %144 : vector<1x32xf32> to vector<9x32xf32>
    %165 = arith.mulf %163, %164 : vector<9x32xf32>
    %166 = vector.broadcast %145 : vector<1x32xf32> to vector<9x32xf32>
    %167 = arith.addf %165, %166 : vector<9x32xf32>
    %168 = vector.shape_cast %167 : vector<9x32xf32> to vector<1x9x32xf32>
    %c0_64 = arith.constant 0 : index
    %c0_65 = arith.constant 0 : index
    %c0_66 = arith.constant 0 : index
    %169 = vector.load %arg21[%c0_64, %c0_65, %c0_66] : memref<1x9x32xf32, #tpu.memory_space<vmem>>, vector<1x9x32xf32>
    tpu.vector_store %arg21[%c0_64, %c0_65, %c0_66], %168 {strides = array<i32>} : memref<1x9x32xf32, #tpu.memory_space<vmem>>, vector<1x9x32xf32>,
    %c1_i32 = arith.constant 1 : i32
    %170 = arith.cmpi eq, %arg1, %c1_i32 : i32
    %171 = arith.extui %170 : i1 to i32
    %c0_i32_67 = arith.constant 0 : i32
    %172 = arith.cmpi ne, %171, %c0_i32_67 : i32
    scf.if %172 {
      %173 = vector.extract_strided_slice %167 {offsets = [0, 0], sizes = [8, 32], strides = [1, 1]} : vector<9x32xf32> to vector<8x32xf32>
      %c0_68 = arith.constant 0 : index
      %c0_69 = arith.constant 0 : index
      %174 = vector.load %arg15[%c0_68, %c0_69] : memref<2x32xf32, #tpu.memory_space<vmem>>, vector<1x32xf32>
      %c1 = arith.constant 1 : index
      %c0_70 = arith.constant 0 : index
      %175 = vector.load %arg15[%c1, %c0_70] : memref<2x32xf32, #tpu.memory_space<vmem>>, vector<1x32xf32>
      %cst_71 = arith.constant dense<0.000000e+00> : vector<8xf32>
      %176 = vector.multi_reduction <add>, %173, %cst_71 [1] : vector<8x32xf32> to vector<8xf32>
      %177 = vector.shape_cast %176 : vector<8xf32> to vector<8x1xf32>
      %cst_72 = arith.constant 3.200000e+01 : f32
      %178 = vector.broadcast %cst_72 : f32 to vector<8x1xf32>
      %179 = arith.divf %177, %178 : vector<8x1xf32>
      %180 = vector.broadcast %179 : vector<8x1xf32> to vector<8x32xf32>
      %181 = arith.subf %173, %180 : vector<8x32xf32>
      %182 = arith.mulf %181, %181 : vector<8x32xf32>
      %cst_73 = arith.constant dense<0.000000e+00> : vector<8xf32>
      %183 = vector.multi_reduction <add>, %182, %cst_73 [1] : vector<8x32xf32> to vector<8xf32>
      %184 = vector.shape_cast %183 : vector<8xf32> to vector<8x1xf32>
      %cst_74 = arith.constant 3.200000e+01 : f32
      %185 = vector.broadcast %cst_74 : f32 to vector<8x1xf32>
      %186 = arith.divf %184, %185 : vector<8x1xf32>
      %187 = vector.broadcast %179 : vector<8x1xf32> to vector<8x32xf32>
      %188 = arith.subf %173, %187 : vector<8x32xf32>
      %cst_75 = arith.constant 9.99999974E-6 : f32
      %189 = vector.broadcast %cst_75 : f32 to vector<8x1xf32>
      %190 = arith.addf %186, %189 : vector<8x1xf32>
      %191 = math.rsqrt %190 : vector<8x1xf32>
      %192 = vector.broadcast %191 : vector<8x1xf32> to vector<8x32xf32>
      %193 = arith.mulf %188, %192 : vector<8x32xf32>
      %194 = vector.broadcast %174 : vector<1x32xf32> to vector<8x32xf32>
      %195 = arith.mulf %193, %194 : vector<8x32xf32>
      %196 = vector.broadcast %175 : vector<1x32xf32> to vector<8x32xf32>
      %197 = arith.addf %195, %196 : vector<8x32xf32>
      %c0_76 = arith.constant 0 : index
      %c0_77 = arith.constant 0 : index
      %198 = vector.load %arg16[%c0_76, %c0_77] : memref<32x32xf32, #tpu.memory_space<vmem>>, vector<32x32xf32>
      %cst_78 = arith.constant dense<0.000000e+00> : vector<8x32xf32>
      %199 = tpu.matmul %197, %198, %cst_78 {dimension_numbers = #tpu.dot_dimension_numbers<[1], [0], [0], [1], [0, 0, 1, 1], [], []>} : vector<8x32xf32>, vector<32x32xf32>, vector<8x32xf32> -> vector<8x32xf32>
      %c0_79 = arith.constant 0 : index
      %c0_80 = arith.constant 0 : index
      %200 = vector.load %arg17[%c0_79, %c0_80] : memref<1x32xf32, #tpu.memory_space<vmem>>, vector<1x32xf32>
      %201 = vector.broadcast %200 : vector<1x32xf32> to vector<8x32xf32>
      %202 = arith.addf %199, %201 : vector<8x32xf32>
      %cst_81 = arith.constant 0.000000e+00 : f32
      %203 = vector.broadcast %cst_81 : f32 to vector<8x32xf32>
      %204 = arith.maximumf %202, %203 : vector<8x32xf32>
      %c0_82 = arith.constant 0 : index
      %c0_83 = arith.constant 0 : index
      %205 = vector.load %arg18[%c0_82, %c0_83] : memref<32x1xf32, #tpu.memory_space<vmem>>, vector<32x1xf32>
      %cst_84 = arith.constant dense<0.000000e+00> : vector<8x1xf32>
      %206 = tpu.matmul %204, %205, %cst_84 {dimension_numbers = #tpu.dot_dimension_numbers<[1], [0], [0], [1], [0, 0, 1, 1], [], []>} : vector<8x32xf32>, vector<32x1xf32>, vector<8x1xf32> -> vector<8x1xf32>
      %c0_85 = arith.constant 0 : index
      %c0_86 = arith.constant 0 : index
      %207 = vector.load %arg19[%c0_85, %c0_86] : memref<1x1xf32, #tpu.memory_space<vmem>>, vector<1x1xf32>
      %208 = vector.broadcast %207 : vector<1x1xf32> to vector<8x1xf32>
      %209 = arith.addf %206, %208 : vector<8x1xf32>
      %210 = arith.negf %209 : vector<8x1xf32>
      %211 = math.exp %210 : vector<8x1xf32>
      %cst_87 = arith.constant 1.000000e+00 : f32
      %212 = vector.broadcast %cst_87 : f32 to vector<8x1xf32>
      %213 = arith.addf %212, %211 : vector<8x1xf32>
      %214 = arith.divf %212, %213 : vector<8x1xf32>
      %215 = vector.shape_cast %214 : vector<8x1xf32> to vector<1x8x1xf32>
      %c0_88 = arith.constant 0 : index
      %c0_89 = arith.constant 0 : index
      %c0_90 = arith.constant 0 : index
      %216 = vector.load %arg20[%c0_88, %c0_89, %c0_90] : memref<1x8x1xf32, #tpu.memory_space<vmem>>, vector<1x8x1xf32>
      tpu.vector_store %arg20[%c0_88, %c0_89, %c0_90], %215 {strides = array<i32>} : memref<1x8x1xf32, #tpu.memory_space<vmem>>, vector<1x8x1xf32>,
    } else {
    }
    return
  }
  func.func @transform_0(%arg0: i32, %arg1: i32, %arg2: memref<2xi32, #tpu.memory_space<smem>>) -> (i32, i32, i32, i32) {
    %c0_i32 = arith.constant 0 : i32
    %c0_i32_0 = arith.constant 0 : i32
    %c0_i32_1 = arith.constant 0 : i32
    %c0_i32_2 = arith.constant 0 : i32
    return %arg0, %c0_i32, %c0_i32_0, %c0_i32_1 : i32, i32, i32, i32
  }
  func.func @transform_1(%arg0: i32, %arg1: i32, %arg2: memref<2xi32, #tpu.memory_space<smem>>) -> (i32, i32, i32) {
    %c0_i32 = arith.constant 0 : i32
    %c0_i32_0 = arith.constant 0 : i32
    %c0_i32_1 = arith.constant 0 : i32
    return %arg0, %c0_i32, %c0_i32_0 : i32, i32, i32
  }
  func.func @transform_2(%arg0: i32, %arg1: i32, %arg2: memref<2xi32, #tpu.memory_space<smem>>) -> (i32, i32) {
    %c0_i32 = arith.constant 0 : i32
    %c0_i32_0 = arith.constant 0 : i32
    %c0_i32_1 = arith.constant 0 : i32
    return %c0_i32, %c0_i32_0 : i32, i32
  }
  func.func @transform_3(%arg0: i32, %arg1: i32, %arg2: memref<2xi32, #tpu.memory_space<smem>>) -> (i32, i32) {
    %c0_i32 = arith.constant 0 : i32
    %c0_i32_0 = arith.constant 0 : i32
    %c0_i32_1 = arith.constant 0 : i32
    return %c0_i32, %c0_i32_0 : i32, i32
  }
  func.func @transform_4(%arg0: i32, %arg1: i32, %arg2: memref<2xi32, #tpu.memory_space<smem>>) -> (i32, i32) {
    %c0_i32 = arith.constant 0 : i32
    %c0_i32_0 = arith.constant 0 : i32
    %c0_i32_1 = arith.constant 0 : i32
    return %c0_i32, %c0_i32_0 : i32, i32
  }
  func.func @transform_5(%arg0: i32, %arg1: i32, %arg2: memref<2xi32, #tpu.memory_space<smem>>) -> (i32, i32, i32) {
    %c0_i32 = arith.constant 0 : i32
    %c0_i32_0 = arith.constant 0 : i32
    %c0_i32_1 = arith.constant 0 : i32
    return %arg1, %c0_i32, %c0_i32_0 : i32, i32, i32
  }
  func.func @transform_6(%arg0: i32, %arg1: i32, %arg2: memref<2xi32, #tpu.memory_space<smem>>) -> (i32, i32, i32) {
    %c0_i32 = arith.constant 0 : i32
    %c0_i32_0 = arith.constant 0 : i32
    %c0_i32_1 = arith.constant 0 : i32
    return %arg1, %c0_i32, %c0_i32_0 : i32, i32, i32
  }
  func.func @transform_7(%arg0: i32, %arg1: i32, %arg2: memref<2xi32, #tpu.memory_space<smem>>) -> (i32, i32, i32) {
    %c0_i32 = arith.constant 0 : i32
    %c0_i32_0 = arith.constant 0 : i32
    %c0_i32_1 = arith.constant 0 : i32
    return %arg1, %c0_i32, %c0_i32_0 : i32, i32, i32
  }
  func.func @transform_8(%arg0: i32, %arg1: i32, %arg2: memref<2xi32, #tpu.memory_space<smem>>) -> (i32, i32, i32) {
    %c0_i32 = arith.constant 0 : i32
    %c0_i32_0 = arith.constant 0 : i32
    %c0_i32_1 = arith.constant 0 : i32
    return %arg1, %c0_i32, %c0_i32_0 : i32, i32, i32
  }
  func.func @transform_9(%arg0: i32, %arg1: i32, %arg2: memref<2xi32, #tpu.memory_space<smem>>) -> (i32, i32, i32) {
    %c0_i32 = arith.constant 0 : i32
    %c0_i32_0 = arith.constant 0 : i32
    %c0_i32_1 = arith.constant 0 : i32
    return %arg1, %c0_i32, %c0_i32_0 : i32, i32, i32
  }
  func.func @transform_10(%arg0: i32, %arg1: i32, %arg2: memref<2xi32, #tpu.memory_space<smem>>) -> (i32, i32, i32) {
    %c0_i32 = arith.constant 0 : i32
    %c0_i32_0 = arith.constant 0 : i32
    %c0_i32_1 = arith.constant 0 : i32
    return %arg1, %c0_i32, %c0_i32_0 : i32, i32, i32
  }
  func.func @transform_11(%arg0: i32, %arg1: i32, %arg2: memref<2xi32, #tpu.memory_space<smem>>) -> (i32, i32, i32) {
    %c0_i32 = arith.constant 0 : i32
    %c0_i32_0 = arith.constant 0 : i32
    %c0_i32_1 = arith.constant 0 : i32
    return %arg1, %c0_i32, %c0_i32_0 : i32, i32, i32
  }
  func.func @transform_12(%arg0: i32, %arg1: i32, %arg2: memref<2xi32, #tpu.memory_space<smem>>) -> (i32, i32) {
    %c0_i32 = arith.constant 0 : i32
    %c0_i32_0 = arith.constant 0 : i32
    %c0_i32_1 = arith.constant 0 : i32
    return %c0_i32, %c0_i32_0 : i32, i32
  }
  func.func @transform_13(%arg0: i32, %arg1: i32, %arg2: memref<2xi32, #tpu.memory_space<smem>>) -> (i32, i32) {
    %c0_i32 = arith.constant 0 : i32
    %c0_i32_0 = arith.constant 0 : i32
    %c0_i32_1 = arith.constant 0 : i32
    return %c0_i32, %c0_i32_0 : i32, i32
  }
  func.func @transform_14(%arg0: i32, %arg1: i32, %arg2: memref<2xi32, #tpu.memory_space<smem>>) -> (i32, i32) {
    %c0_i32 = arith.constant 0 : i32
    %c0_i32_0 = arith.constant 0 : i32
    %c0_i32_1 = arith.constant 0 : i32
    return %c0_i32, %c0_i32_0 : i32, i32
  }
  func.func @transform_15(%arg0: i32, %arg1: i32, %arg2: memref<2xi32, #tpu.memory_space<smem>>) -> (i32, i32) {
    %c0_i32 = arith.constant 0 : i32
    %c0_i32_0 = arith.constant 0 : i32
    %c0_i32_1 = arith.constant 0 : i32
    return %c0_i32, %c0_i32_0 : i32, i32
  }
  func.func @transform_16(%arg0: i32, %arg1: i32, %arg2: memref<2xi32, #tpu.memory_space<smem>>) -> (i32, i32) {
    %c0_i32 = arith.constant 0 : i32
    %c0_i32_0 = arith.constant 0 : i32
    %c0_i32_1 = arith.constant 0 : i32
    return %c0_i32, %c0_i32_0 : i32, i32
  }
  func.func @transform_17(%arg0: i32, %arg1: i32, %arg2: memref<2xi32, #tpu.memory_space<smem>>) -> (i32, i32, i32) {
    %c0_i32 = arith.constant 0 : i32
    %c0_i32_0 = arith.constant 0 : i32
    %c0_i32_1 = arith.constant 0 : i32
    return %arg0, %c0_i32, %c0_i32_0 : i32, i32, i32
  }
}

</mosaic_0001>

<bundles_post_ra>
// kernel: reward_transformer_forward.1
= control target key start
LH: loop header
LB: loop body
LE: loop exit
PB: predicated region body
PF: predicated region fallthrough
CT: control target
= control target key end

     0   :  { %s3801_s0 = inlined_call_operand.vmem [shape: s32[2], index: 0, kind: input, shape index: {}]   ;;  %s3802_s1 = inlined_call_operand.vmem [shape: f32[2,1,8,64], index: 1, kind: input, shape index: {}]   ;;  %s3803_s2 = inlined_call_operand.vmem [shape: f32[2,1,48], index: 2, kind: input, shape index: {}]   ;;  %s3804_s3 = inlined_call_operand.vmem [shape: f32[64,32], index: 3, kind: input, shape index: {}]   ;;  %s3805_s4 = inlined_call_operand.vmem [shape: f32[48,32], index: 4, kind: input, shape index: {}]   ;;  %s3806_s5 = inlined_call_operand.vmem [shape: f32[3,32], index: 5, kind: input, shape index: {}]   ;;  %s3807_s6 = inlined_call_operand.vmem [shape: f32[2,32,96], index: 6, kind: input, shape index: {}]   ;;  %s3808_s7 = inlined_call_operand.vmem [shape: f32[2,1,96], index: 7, kind: input, shape index: {}]   ;;  %s3809_s8 = inlined_call_operand.vmem [shape: f32[2,32,32], index: 8, kind: input, shape index: {}]   ;;  %s3810_s9 = inlined_call_operand.vmem [shape: f32[2,32,128], index: 9, kind: input, shape index: {}]   ;;  %s3811_s10 = inlined_call_operand.vmem [shape: f32[2,1,128], index: 10, kind: input, shape index: {}]   ;;  %s3812_s11 = inlined_call_operand.vmem [shape: f32[2,128,32], index: 11, kind: input, shape index: {}]   ;;  %s3813_s12 = inlined_call_operand.vmem [shape: f32[2,6,32], index: 12, kind: input, shape index: {}]   ;;  %s3814_s13 = inlined_call_operand.vmem [shape: f32[2,32], index: 13, kind: input, shape index: {}]   ;;  %s3815_s14 = inlined_call_operand.vmem [shape: f32[32,32], index: 14, kind: input, shape index: {}]   ;;  %s3816_s15 = inlined_call_operand.vmem [shape: f32[1,32], index: 15, kind: input, shape index: {}]   ;;  %s3817_s16 = inlined_call_operand.vmem [shape: f32[32,1], index: 16, kind: input, shape index: {}]   ;;  %s3818_s18 = inlined_call_operand.vmem [shape: f32[2,8,1], index: 18, kind: output, shape index: {}]   ;;  %s3819_s17 = inlined_call_operand.<no memory space> [shape: f32[1,1], index: 17, kind: input, shape index: {}]  }
   0x1   :  { %3828 = sst [smem:[#allocation15_spill]] %s3801_s0  ;;  %v27_v0 = vstv %s3819_s17 }
   0x2   :  { %3829 = sst [smem:[#allocation16_spill]] %s3802_s1  ;;  %s3838_s29 = sld [smem:[#allocation15_spill]]  ;;  %28 = vst [vmem:[#allocation7] sm:$0x1] %v27_v0 }
   0x3   :  { %3830 = sst [smem:[#allocation17_spill]] %s3803_s2 }
   0x4   :  { %3831 = sst [smem:[#allocation18_spill]] %s3806_s5 }
   0x5   :  { %3832 = sst [smem:[#allocation19_spill]] %s3807_s6 }
   0x6   :  { %3833 = sst [smem:[#allocation20_spill]] %s3809_s8 }
   0x7   :  { %3834 = sst [smem:[#allocation21_spill]] %s3814_s13 }
   0x8   :  { %3835 = sst [smem:[#allocation22_spill]] %s3815_s14  ;;  %s23_s5 = sshll.u32 %s3838_s29, 4  ;;  %s24_s5 = int_to_ptr.vmem [resolvable:$true] %s23_s5 }
   0x9   :  { %3836 = sst [smem:[#allocation23_spill]] %s3816_s15  ;;  %s3208_s19 = scalar_lea.vmem %s24_s5, 16 }
   0xa   :  { %3837 = sst [smem:[#allocation24_spill]] %s3817_s16  ;;  %p3209_p0 = scmp.ne.s32.totalorder %s24_s5, %s3208_s19 }
   0xb   :  { %p3213_p1 = scmp.lt.s32.totalorder %s24_s5, %s24_s5  ;;  %p3214_p2 = scmp.lt.s32.totalorder %s3208_s19, %s3208_s19 }
   0xd   :  { %p3215_p3 = por %p3214_p2, %p3213_p1 }
   0xf   :  { %p3216_p4 = pnand %p3215_p3, %p3209_p0 }
  0x11   :  { %3219 = shalt.err (!%p3216_p4)  }
  0x12   :  { %s3262_s1 = smov [#allocation6]  }
  0x13   :  { %26 = dma.vmem_to_smem %s24_s5, 16, %s3262_s1, [#allocation5] }
  0x14   :  { %3240 = dma.done.wait [#allocation5], 16 }
  0x15   :  { %3241 = vsyncadd [#allocation5], 4294967280 }
  0x16   :  { %30 = sfence }
  0x17   :  { %s3385_s20 = smov 0   ;;  %s3387_s21 = smov 0  }
  0x18   :  { %s3389_s22 = smov 0   ;;  %s3391_s17 = smov 0  }
  0x19   :  { %s3393_s2 = smov 0  }
  0x1a LB: > { %3839 = sst [smem:[#allocation9_spill]] %s3248_s21  ;;  %s45_s5 = sadd.s32 1, %s3252_s22  ;;  %s3260_s2 = sphi %s3393_s2, %s36_s2   ;;  %s3256_s17 = sphi %s3391_s17, %s3866_s17   ;;  %s3252_s22 = sphi %s3389_s22, %s3865_s22   ;;  %s3248_s21 = sphi %s3387_s21, %s3864_s21   ;;  %s3244_s20 = sphi %s3385_s20, %s3863_s20  }
  0x1b   : > { %3840 = sst [smem:[#allocation10_spill]] %s3252_s22  ;;  %s48_s23 = sadd.s32 1, %s3256_s17 }
  0x1c   : > { %3841 = sst [smem:[#allocation11_spill]] %s3256_s17  ;;  %p46_p5 = scmp.ge.s32.totalorder %s45_s5, 2 }
  0x1d   : > { %3842 = sst [smem:[#allocation12_spill]] %s3260_s2  ;;  %p2581_p6 = scmp.ge.s32.totalorder %s3260_s2, 1 }
  0x1e   : > { %p580_p7 = scmp.lt.s32.totalorder %s3260_s2, 5  ;;  %s3868_s5 = smov (%p46_p5, %s45_s5), 0 }
  0x1f   : > { %3843 = sst [smem:[#allocation13_spill]] %s3868_s5  ;;  %s3870_s23 = smov (!%p46_p5, %s48_s23), %s3256_s17 }
  0x20   : > { %p581_p8 = pnand %p2581_p6, %p580_p7  ;;  %p50_p9 = scmp.ge.s32.totalorder %s3870_s23, 2 }
  0x21   : > { %p663_p10 = scmp.lt.s32.totalorder (!%p581_p8), %s3248_s21, 1  ;;  %p670_p11 = scmp.lt.s32.totalorder (!%p581_p8), %s3244_s20, 1 }
  0x22   : > { %s3872_s23 = smov (%p50_p9, %s3870_s23), 0  ;;  %584 = sbr.rel (%p581_p8) target bundleno = 4119 (0x1017), region = 88 }
  0x23   : > { %3844 = sst [smem:[#allocation14_spill]] %s3872_s23  ;;  %s3846_s1 = sld [smem:[#allocation16_spill]] (!%p581_p8) }
  0x24   : > { %s3847_s6 = sld [smem:[#allocation19_spill]] (!%p581_p8)  ;;  %s3848_s8 = sld [smem:[#allocation20_spill]] (!%p581_p8) }
  0x25   : > { %p2593_p12 = scmp.ne.s32.totalorder (!%p581_p8), %s3244_s20, 0 }
  0x29   : > { %s3422_s24 = scalar_select %p663_p10, %s3248_s21, 1 }
  0x2a   : > { %s3425_s25 = scalar_select %p670_p11, %s3244_s20, 1 }
  0x2b   : > { %s2582_s26 = sshll.u32 %s3422_s24, 3  ;;  %707 = sbr.rel (%p2593_p12) target bundleno = 278 (0x116), region = 92  ;;  %v709_v1 = vld [vmem:[%s3804_s3] sm:$0xff] (!%p2593_p12)  ;;  %v710_v2 = vld [vmem:[%s3804_s3 + $0x8] sm:$0xff] (!%p2593_p12)  ;;  %v711_v3 = vld [vmem:[%s3804_s3 + $0x10] sm:$0xff] (!%p2593_p12)  ;;  %v3263_v4 = vmov (!%p2593_p12), 0.0|0.0   ;;  %v796_v26 = vlaneseq (!%p2593_p12) }
  0x2c   : > { %s3435_s23 = scalar_lea.vmem %s3846_s1, %s2582_s26  ;;  %s2645_s5 = sshll.u32 %s3425_s25, 5  ;;  %2923 = vmatprep.subr.bf16.mxu0 (!%p2593_p12), %v3263_v4  ;;  %v2924_v5 = vpack.c.bf16 (!%p2593_p12), %v710_v2, %v709_v1  ;;  %v712_v6 = vld [vmem:[%s3804_s3 + $0x18] sm:$0xff] (!%p2593_p12)  ;;  %2935 = vmatprep.subr.bf16.mxu1 (!%p2593_p12), %v3263_v4  ;;  %v809_v7 = vld [vmem:[%s3805_s4] sm:$0xff] (!%p2593_p12)  ;;  %v810_v8 = vld [vmem:[%s3805_s4 + $0x8] sm:$0xff] (!%p2593_p12)  ;;  %vm3264_vm0 = vmmov (!%p2593_p12), 0   ;;  %v3265_v11 = vmov (!%p2593_p12), 0.0  }
  0x2d   : > { %s3441_s2 = scalar_lea.vmem %s3847_s6, %s2645_s5  ;;  %s3450_s27 = scalar_lea.vmem %s3848_s8, %s2645_s5  ;;  %v2936_v9 = vpack.c.bf16 (!%p2593_p12), %v810_v8, %v809_v7  ;;  %v811_v10 = vld [vmem:[%s3805_s4 + $0x10] sm:$0xff] (!%p2593_p12)  ;;  %2759 = vmatprep.mubr.msk.f32.mxu0 (!%p2593_p12), %vm3264_vm0, %v3265_v11  ;;  %2774 = vmatprep.mubr.msk.f32.mxu1 (!%p2593_p12), %vm3264_vm0, %v3265_v11  ;;  %v2927_v12 = vpack.c.bf16 (!%p2593_p12), %v712_v6, %v711_v3  ;;  %v812_v13 = vld [vmem:[%s3805_s4 + $0x18] sm:$0xff] (!%p2593_p12)  ;;  %v713_v14 = vld [vmem:[%s3804_s3 + $0x20] sm:$0xff] (!%p2593_p12)  ;;  %vm816_vm1 = vcmask (!%p2593_p12), 392192   ;;  %vm722_vm2 = vcmask (!%p2593_p12), 523264  }
  0x2e   : > { %s3455_s0 = scalar_lea.vmem %s3810_s9, %s2645_s5  ;;  %s690_s22 = scalar_lea.vmem %s3811_s10, %s3425_s25  ;;  %2925 = vmatpush3.bf16.msra.mxu0 (!%p2593_p12), %v2924_v5  ;;  %v714_v15 = vld [vmem:[%s3804_s3 + $0x28] sm:$0xff] (!%p2593_p12)  ;;  %v2939_v16 = vpack.c.bf16 (!%p2593_p12), %v812_v13, %v811_v10  ;;  %v813_v17 = vld [vmem:[%s3805_s4 + $0x20] sm:$0xff] (!%p2593_p12)  ;;  %v715_v20 = vld [vmem:[%s3804_s3 + $0x30] sm:$0xff] (!%p2593_p12)  ;;  %v896_v27 = vand.u32 (!%p2593_p12), 127, %v796_v26  ;;  %vm900_vm4 = vcmask (!%p2593_p12), 57344   ;;  %vm902_vm5 = vcmask (!%p2593_p12), 65600  }
  0x2f   : > { %s2648_s17 = sshll.u32 %s3425_s25, 7  ;;  %s2591_s15 = sshll.u32 %s3425_s25, 3  ;;  %2926 = vmatprep.subr.bf16.mxu0 (!%p2593_p12), %v3263_v4  ;;  %2937 = vmatpush3.bf16.msra.mxu1 (!%p2593_p12), %v2936_v9  ;;  %v814_v18 = vld [vmem:[%s3805_s4 + $0x28] sm:$0xff] (!%p2593_p12)  ;;  %v2930_v19 = vpack.c.bf16 (!%p2593_p12), %v714_v15, %v713_v14  ;;  %v716_v21 = vld [vmem:[%s3804_s3 + $0x38] sm:$0xff] (!%p2593_p12)  ;;  %v708_v25 = vld [vmem:[%s3435_s23] sm:$0xff] (!%p2593_p12)  ;;  %v797_v30 = vshrl.u32 (!%p2593_p12), %v796_v26, 7 }
  0x30   : > { %s3465_s13 = scalar_lea.vmem %s3812_s11, %s2648_s17  ;;  %s3471_s21 = scalar_lea.vmem %s3813_s12, %s2591_s15  ;;  %2938 = vmatprep.subr.bf16.mxu1 (!%p2593_p12), %v3263_v4  ;;  %v2942_v22 = vpack.c.bf16 (!%p2593_p12), %v814_v18, %v813_v17  ;;  %v2933_v23 = vpack.c.bf16 (!%p2593_p12), %v716_v21, %v715_v20  ;;  %vm892_vm7 = vcmask (!%p2593_p12), 253952   ;;  %vm890_vm8 = vcmask (!%p2593_p12), 261120  }
  0x31   : > { %s3476_s5 = scalar_lea.vmem %s3818_s18, %s2582_s26  ;;  %s3849_s6 = sld [smem:[#allocation9_spill]] (!%p2593_p12)  ;;  %vm799_vm6 = vcmp.eq.s32.totalorder (!%p2593_p12), %v797_v30, 0 }
  0x32   : > { %2928 = vmatpush3.bf16.msra.mxu0 %v2927_v12  ;;  %s3850_s26 = sld [smem:[#allocation17_spill]]  ;;  %s3852_s28 = sld [smem:[#allocation18_spill]] }
  0x33   : > { %2929 = vmatprep.subr.bf16.mxu0 %v3263_v4  ;;  %2940 = vmatpush3.bf16.msra.mxu1 %v2939_v16 }
  0x34   : > { %2941 = vmatprep.subr.bf16.mxu1 %v3263_v4 }
  0x36   : > { %2931 = vmatpush3.bf16.msra.mxu0 %v2930_v19 }
  0x37   : > { %2932 = vmatprep.subr.bf16.mxu0 %v3263_v4  ;;  %2943 = vmatpush3.bf16.msra.mxu1 %v2942_v22  ;;  %s894_s15 = sld [smem:[#allocation6 + %s3849_s6]] }
  0x38   : > { %s3851_s17 = scalar_lea.vmem %s3850_s26, %s3422_s24  ;;  %v815_v31 = vld [vmem:[%s3852_s28 + $0x1] sm:$0x1]  ;;  %v2596_v32 = vld [vmem:[%s3852_s28 + $0x2] ss:$0 sm:$0xff]  ;;  %v2594_v34 = vld [vmem:[%s3852_s28] ss:$0 sm:$0xff] }
  0x39   : > { %v808_v24 = vld [vmem:[%s3851_s17] sm:$0x1]  ;;  %v806_v38 = vsel %vm799_vm6, %v2596_v32, 0.0 }
  0x3a   : > { %2934 = vmatpush3.bf16.msra.mxu0 %v2933_v23  ;;  %2775 = vmatmul.mubr.msk.f32.vlgmr.msra.gmra.mrb[0].mxu1 %vm816_vm1, %v808_v24 }
  0x3d   : > { %2760 = vmatmul.mubr.msk.f32.vlgmr.msra.gmra.mrb[0].mxu0 %vm722_vm2, %v708_v25  ;;  %v897_v28 = vstv %s894_s15 }
  0x3e   : > { %vm898_vm3 = vcmp.ge.s32.totalorder %v896_v27, %v897_v28 }
  0x3f   : > { %v899_v29 = vsel %vm898_vm3, -1e+09, %v3265_v11 }
  0x40   : > { %901 = vst.msk [vmem:[#allocation3] sm:$0x1] %vm900_vm4, %v899_v29 }
  0x41   : > { %903 = vst.msk [vmem:[#allocation3] sm:$0x1] %vm902_vm5, %v3265_v11 }
 0x10d   : > { %v886_v33 = vpop.f32.mrb[0].mxu1 }
 0x10e   : > { %v887_v35 = vadd.f32 %v886_v33, %v815_v31  ;;  %v2776_v36 = vpop.f32.mrb[1].mxu1 }
 0x110   : > { %v792_v37 = vpop.f32.mrb[0].mxu0  ;;  %893 = vst.msk [vmem:[#allocation2 + $0x8] sm:$0x1] %vm892_vm7, %v887_v35 }
 0x111   : > { %v793_v39 = vadd.f32 %v2594_v34, %v792_v37  ;;  %v2761_v40 = vpop.f32.mrb[1].mxu0 }
 0x113   : > { %v807_v41 = vadd.f32 %v806_v38, %v793_v39 }
 0x115   : > { %891 = vst.msk [vmem:[#allocation2] sm:$0xff] %vm890_vm8, %v807_v41 }
 0x116 PF: > { %v908_v42 = vld [vmem:[%s3441_s2] sm:$0xff]  ;;  %v909_v43 = vld [vmem:[%s3441_s2 + $0x8] sm:$0xff]  ;;  %v910_v44 = vld [vmem:[%s3441_s2 + $0x10] sm:$0xff]  ;;  %vm919_vm9 = vcmask 261120   ;;  %s3853_s16 = scalar_lea.vmem %s3808_s7, %s3425_s25  ;;  %vm1015_vm10 = vcmask 64512   ;;  %s3267_s8 = smov 96  }
 0x117   : > { %v2944_v45 = vpack.c.bf16 %v909_v43, %v908_v42  ;;  %v911_v46 = vld [vmem:[%s3441_s2 + $0x18] sm:$0xff]  ;;  %v3545_v49 = vld [vmem:[#allocation2 + $0x8] sm:$0x1]  ;;  %v2598_v50 = vld [vmem:[%s3853_s16] ss:$0 sm:$0xff]  ;;  %s3266_s2 = smov 80  }
 0x118   : > { %v2948_v48 = vpack.c.bf16 %v911_v46, %v910_v44  ;;  %s3268_s26 = smov 88   ;;  %s3269_s17 = smov 120   ;;  %vm3571_vm11 = vmpackc.low %vm1015_vm10, %vm1015_vm10  ;;  %v3593_v15 = vld [vmem:[#allocation3] ss:$0 sm:$0xff]  ;;  %vm1105_vm12 = vcmask 65536   ;;  %vm1101_vm13 = vcmask 72704  }
 0x119   : > { %2945 = vmatprep.subr.bf16.mxu1 %v2944_v45  ;;  %s3270_s15 = smov 112   ;;  %s3271_s14 = smov 72   ;;  %vm1136_vm14 = vcmask 1040384   ;;  %vm3274_vm15 = vmmov 1   ;;  %vm1215_vm1 = vcmask 57344   ;;  %vm1428_vm2 = vcmask 122944  }
 0x11a   : > { %2947 = vmatpush3.bf16.msra.mxu1 %v2944_v45  ;;  %s3272_s24 = smov 104   ;;  %s3273_s29 = smov 48   ;;  %vm3613_vm0 = vmpackc.low %vm1136_vm14, %vm3274_vm15  ;;  %vm1426_vm3 = vcmask 130112   ;;  %vm1641_vm4 = vcmask 188544   ;;  %vm1639_vm5 = vcmask 195712   ;;  %vm1854_vm6 = vcmask 254144  }
 0x11b   : > { %2949 = vmatprep.subr.bf16.mxu1 %v2948_v48  ;;  %s3275_s23 = smov 56   ;;  %s3276_s19 = smov 40   ;;  %vm1852_vm7 = vcmask 261312   ;;  %vm1952_vm8 = vcmask 253952  }
 0x11c   : > { %v3541_v47 = vld [vmem:[#allocation2] sm:$0xff]  ;;  %s3277_s6 = smov 64   ;;  %s3278_s30 = smov 8  }
 0x11d   : > { %2785 = vmatprep.mubr.msk.f32.mxu1 %vm919_vm9, %v3541_v47  ;;  %s3279_s1 = smov 16   ;;  %s3280_s16 = smov 24  }
 0x11e   : > { %2951 = vmatpush3.bf16.msra.mxu1 %v2948_v48  ;;  %p2635_p13 = scmp.ne.s32.totalorder %s3244_s20, 1 }
 0x11f   : > { %s3861_s20 = sld [smem:[#allocation23_spill]] (!%p2635_p13) }
 0x121   : > { %2786 = vmatmul.mubr.msk.f32.vlgmr.msra.gmra.mrb[0].mxu1 %vm919_vm9, %v3545_v49 }
 0x1f4   : > { %v2787_v51 = vpop.f32.mrb[0].mxu1 }
 0x1f5   : > { %v998_v52 = vadd.f32 %v2787_v51, %v2598_v50  ;;  %v992_v53 = vpop.f32.mrb[1].mxu1 }
 0x1f6   : > { %v993_v54 = vadd.f32 %v2598_v50, %v992_v53 }
 0x1f7   : > { %v3564_v57 = vmul.f32 0.35355338, %v998_v52 }
 0x1f8   : > { %v3554_v55 = vpack.i.bf16 %v998_v52, %v993_v54  ;;  %v3556_v56 = vmul.f32 0.35355338, %v993_v54 }
 0x1fa   : > { %3133 = vrot.lane.b32.xlu1 %v3554_v55, %s3266_s2  ;;  %3123 = vrot.lane.b32.xlu0 %v3554_v55, %s3267_s8 }
 0x1fb   : > { %2792 = vmatprep.mubr.msk.f32.mxu1 %vm1015_vm10, %v3556_v56 }
 0x1fe   : > { %3128 = vrot.lane.b32.xlu0 %v3554_v55, %s3268_s26  ;;  %1217 = vrot.lane.b32.xlu1 %v3556_v56, %s3269_s17 }
 0x202   : > { %1219 = vrot.lane.b32.xlu0 %v3564_v57, %s3269_s17  ;;  %1430 = vrot.lane.b32.xlu1 %v3556_v56, %s3270_s15 }
 0x206   : > { %1432 = vrot.lane.b32.xlu0 %v3564_v57, %s3270_s15 }
 0x26c   : > { %v3124_v58 = vpop.permute.xlu0 %3123  ;;  %v3134_v2 = vpop.permute.xlu1 %3133 }
 0x26d   : > { %v3126_v59 = vunpack.i.h.bf16 %v3124_v58  ;;  %v3125_v60 = vunpack.i.l.bf16 %v3124_v58  ;;  %v3136_v4 = vunpack.i.h.bf16 %v3134_v2  ;;  %v3135_v5 = vunpack.i.l.bf16 %v3134_v2 }
 0x26f   : > { %v2952_v62 = vpack.c.bf16 %v3126_v59, %v3125_v60  ;;  %v2976_v6 = vpack.c.bf16 %v3136_v4, %v3135_v5 }
 0x270   : > { %v3129_v63 = vpop.permute.xlu0 %3128  ;;  %v1218_v7 = vpop.permute.xlu1 %1217 }
 0x271   : > { %v3131_v0 = vunpack.i.h.bf16 %v3129_v63  ;;  %v3130_v1 = vunpack.i.l.bf16 %v3129_v63  ;;  %2954 = vmatprep.subr.msk.bf16.mxu1 %vm3571_vm11, %v2952_v62 }
 0x272   : > { %2957 = vmatpush3.bf16.xpose.msk.msra.mxu1 %vm3571_vm11, %v2952_v62 }
 0x273   : > { %v2964_v3 = vpack.c.bf16 %v3131_v0, %v3130_v1 }
 0x274   : > { %v1220_v8 = vpop.permute.xlu0 %1219  ;;  %v1431_v9 = vpop.permute.xlu1 %1430 }
 0x275   : > { %2966 = vmatprep.subr.msk.bf16.mxu1 %vm3571_vm11, %v2964_v3 }
 0x278   : > { %v1433_v10 = vpop.permute.xlu0 %1432 }
 0x279   : > { %2793 = vmatmul.mubr.msk.f32.vlgmr.msra.gmra.mrb[2].mxu1 %vm1015_vm10, %v3564_v57 }
 0x27a   : > { %2969 = vmatpush3.bf16.xpose.msk.msra.mxu1 %vm3571_vm11, %v2964_v3  ;;  %2806 = vmatprep.mubr.msk.f32.mxu1 %vm1015_vm10, %v1218_v7 }
 0x27b   : > { %2978 = vmatprep.subr.msk.bf16.mxu1 %vm3571_vm11, %v2976_v6 }
 0x281   : > { %2807 = vmatmul.mubr.msk.f32.vlgmr.msra.gmra.mrb[4].mxu1 %vm1015_vm10, %v1220_v8 }
 0x282   : > { %2981 = vmatpush3.bf16.xpose.msk.msra.mxu1 %vm3571_vm11, %v2976_v6  ;;  %2820 = vmatprep.mubr.msk.f32.mxu1 %vm1015_vm10, %v1431_v9 }
 0x289   : > { %2821 = vmatmul.mubr.msk.f32.vlgmr.msra.gmra.mrb[6].mxu1 %vm1015_vm10, %v1433_v10 }
 0x34c   : > { %v2794_v11 = vpop.f32.mrb[2].mxu1 }
 0x34d   : > { %v1092_v12 = vpop.f32.mrb[3].mxu1  ;;  %v1098_v33 = vadd.f32 %v2794_v11, %v3593_v15 }
 0x34e   : > { %v1093_v32 = vadd.f32 %v3593_v15, %v1092_v12 }
 0x34f   : > { %v1106_v37 = vsel %vm1105_vm12, %v1098_v33, -inf }
 0x350   : > { %v1102_v35 = vsel %vm1101_vm13, %v1093_v32, -inf }
 0x354   : > { %v2808_v13 = vpop.f32.mrb[4].mxu1 }
 0x355   : > { %v1299_v14 = vpop.f32.mrb[5].mxu1  ;;  %v1305_v34 = vadd.f32 %v2808_v13, %v3593_v15 }
 0x356   : > { %v1300_v36 = vadd.f32 %v3593_v15, %v1299_v14 }
 0x357   : > { %v1311_v38 = vsel %vm1105_vm12, %v1305_v34, -inf }
 0x358   : > { %v1308_v39 = vsel %vm1101_vm13, %v1300_v36, -inf }
 0x35c   : > { %v2822_v16 = vpop.f32.mrb[6].mxu1 }
 0x35d   : > { %v1518_v17 = vadd.f32 %v2822_v16, %v3593_v15  ;;  %v1512_v18 = vpop.f32.mrb[7].mxu1 }
 0x35e   : > { %v1513_v19 = vadd.f32 %v3593_v15, %v1512_v18 }
 0x35f   : > { %v1524_v20 = vsel %vm1105_vm12, %v1518_v17, -inf }
 0x360   : > { %1525 = vmax.xlane.f32.xlu0 %v1524_v20  ;;  %v1521_v21 = vsel %vm1101_vm13, %v1513_v19, -inf }
 0x361   : > { %1522 = vmax.xlane.f32.xlu1 %v1521_v21 }
 0x3ed   : > { %v1526_v22 = vpop.xlane.xlu0 %1525 }
 0x3ee   : > { %v1528_v23 = vsub.f32 %v1518_v17, %v1526_v22  ;;  %v1523_v24 = vpop.xlane.xlu1 %1522 }
 0x3ef   : > { %v1527_v25 = vsub.f32 %v1513_v19, %v1523_v24 }
 0x3f0   : > { %v1531_v26 = vmul.f32 1.442695, %v1528_v23 }
 0x3f1   : > { %v1529_v27 = vmul.f32 1.442695, %v1527_v25 }
 0x3f2   : > { %3162 = vpow2.f32 %v1531_v26 }
 0x3f3   : > { %3164 = vpow2.f32 %v1529_v27 }
 0x3fc   : > { %v3163_v28 = vpop.eup %3162 }
 0x3fd   : > { %v3165_v29 = vpop.eup %3164  ;;  %v1536_v30 = vsel %vm1105_vm12, %v3163_v28, 0.0 }
 0x3fe   : > { %1537 = vadd.xlane.f32.xlu1 %v1536_v30  ;;  %v1533_v31 = vsel %vm1101_vm13, %v3165_v29, 0.0 }
 0x3ff   : > { %1534 = vadd.xlane.f32.xlu0 %v1533_v31 }
 0x40f   : > { %3143 = vrot.lane.b32.xlu1 %v3554_v55, %s3271_s14 }
 0x413   : > { %1643 = vrot.lane.b32.xlu1 %v3556_v56, %s3272_s24 }
 0x415   : > { %3138 = vrot.lane.b32.xlu0 %v3554_v55, %s3273_s29 }
 0x419   : > { %1645 = vrot.lane.b32.xlu0 %v3564_v57, %s3272_s24  ;;  %s3859_s24 = sld [smem:[#allocation24_spill]] (!%p2635_p13) }
 0x437   : > { %1103 = vmax.xlane.f32.xlu1 %v1102_v35 }
 0x438   : > { %1107 = vmax.xlane.f32.xlu0 %v1106_v37 }
 0x43b   : > { %1312 = vmax.xlane.f32.xlu1 %v1311_v38 }
 0x43c   : > { %1309 = vmax.xlane.f32.xlu0 %v1308_v39 }
 0x48b   : > { %v1538_v40 = vpop.xlane.xlu1 %1537 }
 0x48c   : > { %3166 = vrcp.f32 %v1538_v40  ;;  %v1535_v41 = vpop.xlane.xlu0 %1534 }
 0x48d   : > { %3168 = vrcp.f32 %v1535_v41 }
 0x48f   : > { %v3144_v42 = vpop.permute.xlu1 %3143 }
 0x490   : > { %v3139_v43 = vpop.permute.xlu0 %3138  ;;  %v3146_v44 = vunpack.i.h.bf16 %v3144_v42  ;;  %v3145_v45 = vunpack.i.l.bf16 %v3144_v42 }
 0x491   : > { %v3141_v46 = vunpack.i.h.bf16 %v3139_v43  ;;  %v3140_v48 = vunpack.i.l.bf16 %v3139_v43 }
 0x492   : > { %v2988_v52 = vpack.c.bf16 %v3146_v44, %v3145_v45 }
 0x493   : > { %v2982_v51 = vpack.c.bf16 %v3141_v46, %v3140_v48  ;;  %v1644_v58 = vpop.permute.xlu1 %1643 }
 0x494   : > { %v1646_v59 = vpop.permute.xlu0 %1645 }
 0x495   : > { %2984 = vmatprep.subr.msk.bf16.mxu1 %vm3613_vm0, %v2982_v51 }
 0x496   : > { %v3167_v53 = vpop.eup %3166  ;;  %2987 = vmatpush3.bf16.msk.msra.mxu1 %vm3613_vm0, %v2982_v51 }
 0x497   : > { %v3169_v54 = vpop.eup %3168  ;;  %2990 = vmatprep.subr.msk.bf16.mxu1 %vm3571_vm11, %v2988_v52  ;;  %v1542_v57 = vmul.f32 %v3167_v53, %v3163_v28 }
 0x498   : > { %v1541_v56 = vmul.f32 %v3169_v54, %v3165_v29 }
 0x49a   : > { %2827 = vmatprep.mubr.msk.f32.mxu1 %vm1101_vm13, %v1541_v56 }
 0x49b   : > { %2828 = vmatmul.mubr.msk.f32.vlgmr.msra.gmra.mrb[8].mxu1 %vm1101_vm13, %v1542_v57 }
 0x49c   : > { %2834 = vmatprep.mubr.msk.f32.mxu1 %vm1015_vm10, %v1644_v58 }
 0x49f   : > { %2993 = vmatpush3.bf16.xpose.msk.msra.mxu1 %vm3571_vm11, %v2988_v52  ;;  %vm2424_vm11 = vcmask (!%p2635_p13), 7168  }
 0x4a6   : > { %2835 = vmatmul.mubr.msk.f32.vlgmr.msra.gmra.mrb[10].mxu1 %vm1015_vm10, %v1646_v59 }
 0x4c4   : > { %v1104_v60 = vpop.xlane.xlu1 %1103 }
 0x4c5   : > { %v1108_v62 = vpop.xlane.xlu0 %1107  ;;  %v1109_v0 = vsub.f32 %v1093_v32, %v1104_v60 }
 0x4c6   : > { %v1110_v63 = vsub.f32 %v1098_v33, %v1108_v62 }
 0x4c7   : > { %v1111_v7 = vmul.f32 1.442695, %v1109_v0 }
 0x4c8   : > { %v1313_v1 = vpop.xlane.xlu1 %1312  ;;  %v1113_v4 = vmul.f32 1.442695, %v1110_v63 }
 0x4c9   : > { %v1310_v2 = vpop.xlane.xlu0 %1309  ;;  %v1315_v5 = vsub.f32 %v1305_v34, %v1313_v1 }
 0x4ca   : > { %v1314_v8 = vsub.f32 %v1300_v36, %v1310_v2  ;;  %3170 = vpow2.f32 %v1113_v4 }
 0x4cb   : > { %v1318_v61 = vmul.f32 1.442695, %v1315_v5  ;;  %3172 = vpow2.f32 %v1111_v7 }
 0x4cc   : > { %v1316_v9 = vmul.f32 1.442695, %v1314_v8  ;;  %v1858_v8 = vld [vmem:[%s3450_s27] sm:$0xff] }
 0x4cd   : > { %3174 = vpow2.f32 %v1318_v61  ;;  %v1859_v61 = vld [vmem:[%s3450_s27 + $0x8] sm:$0xff] }
 0x4ce   : > { %3176 = vpow2.f32 %v1316_v9  ;;  %v1860_v9 = vld [vmem:[%s3450_s27 + $0x10] sm:$0xff] }
 0x4d4   : > { %v3636_v16 = vpop.eup %3170 }
 0x4d5   : > { %v3173_v18 = vpop.eup %3172  ;;  %v1118_v19 = vsel %vm1105_vm12, %v3636_v16, 0.0 }
 0x4d6   : > { %v1115_v21 = vsel %vm1101_vm13, %v3173_v18, 0.0 }
 0x4d7   : > { %v3641_v20 = vpop.eup %3174 }
 0x4d8   : > { %v3177_v22 = vpop.eup %3176 }
 0x4d9   : > { %v1320_v23 = vsel %vm1101_vm13, %v3177_v22, 0.0 }
 0x56e   : > { %v3629_v3 = vpop.f32.mrb[8].mxu1 }
 0x56f   : > { %v3631_v6 = vpop.f32.mrb[9].mxu1 }
 0x579   : > { %v2836_v10 = vpop.f32.mrb[10].mxu1 }
 0x57a   : > { %v1731_v11 = vadd.f32 %v2836_v10, %v3593_v15  ;;  %v1725_v12 = vpop.f32.mrb[11].mxu1  ;;  %v3000_v10 = vpack.c.bf16 %v1859_v61, %v1858_v8  ;;  %v2095_v61 = vld [vmem:[%s3465_s13 + $0x60] sm:$0xff] }
 0x57b   : > { %v1726_v13 = vadd.f32 %v3593_v15, %v1725_v12  ;;  %v1323_v15 = vsel %vm1105_vm12, %v3641_v20, 0.0 }
 0x57c   : > { %v1737_v14 = vsel %vm1105_vm12, %v1731_v11, -inf }
 0x57d   : > { %1738 = vmax.xlane.f32.xlu1 %v1737_v14  ;;  %v1734_v17 = vsel %vm1101_vm13, %v1726_v13, -inf }
 0x57e   : > { %1735 = vmax.xlane.f32.xlu0 %v1734_v17 }
 0x581   : > { %1119 = vadd.xlane.f32.xlu1 %v1118_v19 }
 0x582   : > { %1116 = vadd.xlane.f32.xlu0 %v1115_v21 }
 0x585   : > { %1324 = vadd.xlane.f32.xlu1 %v1323_v15  ;;  %v1862_v15 = vlaneseq }
 0x586   : > { %1321 = vadd.xlane.f32.xlu0 %v1320_v23 }
 0x587   : > { %v3681_v23 = vshrl.u32 %v1862_v15, 7 }
 0x60a   : > { %v1739_v24 = vpop.xlane.xlu1 %1738 }
 0x60b   : > { %v1741_v25 = vsub.f32 %v1731_v11, %v1739_v24  ;;  %v1736_v26 = vpop.xlane.xlu0 %1735  ;;  %v1861_v11 = vld [vmem:[%s3450_s27 + $0x18] sm:$0xff]  ;;  %v1864_v24 = vsub.s32 0, %v3681_v23 }
 0x60c   : > { %v1740_v27 = vsub.f32 %v1726_v13, %v1736_v26  ;;  %v3004_v12 = vpack.c.bf16 %v1861_v11, %v1860_v9  ;;  %v2096_v9 = vld [vmem:[%s3465_s13 + $0x68] sm:$0xff] }
 0x60d   : > { %v1744_v28 = vmul.f32 1.442695, %v1741_v25  ;;  %v3685_v25 = vld [vmem:[%s3471_s21] sm:$0x3f] }
 0x60e   : > { %v1742_v29 = vmul.f32 1.442695, %v1740_v27  ;;  %v1120_v37 = vpop.xlane.xlu1 %1119  ;;  %v1865_v26 = vrot.slane %v3685_v25, %v1864_v24 }
 0x60f   : > { %3178 = vpow2.f32 %v1744_v28  ;;  %v1117_v30 = vpop.xlane.xlu0 %1116 }
 0x610   : > { %3180 = vpow2.f32 %v1742_v29 }
 0x611   : > { %3182 = vrcp.f32 %v1117_v30 }
 0x612   : > { %v1325_v38 = vpop.xlane.xlu1 %1324  ;;  %3184 = vrcp.f32 %v1120_v37 }
 0x613   : > { %v1322_v39 = vpop.xlane.xlu0 %1321 }
 0x614   : > { %3186 = vrcp.f32 %v1322_v39 }
 0x615   : > { %3188 = vrcp.f32 %v1325_v38 }
 0x619   : > { %v3179_v31 = vpop.eup %3178 }
 0x61a   : > { %v3181_v32 = vpop.eup %3180  ;;  %v1749_v33 = vsel %vm1105_vm12, %v3179_v31, 0.0 }
 0x61b   : > { %1750 = vadd.xlane.f32.xlu1 %v1749_v33  ;;  %v1746_v34 = vsel %vm1101_vm13, %v3181_v32, 0.0  ;;  %v3183_v35 = vpop.eup %3182 }
 0x61c   : > { %1747 = vadd.xlane.f32.xlu0 %v1746_v34  ;;  %v1123_v36 = vmul.f32 %v3183_v35, %v3173_v18  ;;  %v3185_v53 = vpop.eup %3184 }
 0x61d   : > { %v1124_v58 = vmul.f32 %v3185_v53, %v3636_v16  ;;  %v2084_v53 = vld [vmem:[%s3465_s13 + $0x8] sm:$0xff] }
 0x61e   : > { %2799 = vmatprep.mubr.msk.f32.mxu0 %vm1101_vm13, %v1123_v36 }
 0x62c   : > { %3153 = vrot.lane.b32.xlu1 %v3554_v55, %s3275_s23 }
 0x630   : > { %3158 = vrot.lane.b32.xlu1 %v3554_v55, %s3276_s19 }
 0x632   : > { %3148 = vrot.lane.b32.xlu0 %v3554_v55, %s3277_s6  ;;  %v3187_v55 = vpop.eup %3186 }
 0x633   : > { %v3189_v59 = vpop.eup %3188  ;;  %v1328_v60 = vmul.f32 %v3187_v55, %v3177_v22  ;;  %v2085_v55 = vld [vmem:[%s3465_s13 + $0x10] sm:$0xff] }
 0x634   : > { %v1329_v0 = vmul.f32 %v3189_v59, %v3641_v20  ;;  %v2088_v59 = vld [vmem:[%s3465_s13 + $0x28] sm:$0xff] }
 0x6a8   : > { %v1751_v40 = vpop.xlane.xlu1 %1750 }
 0x6a9   : > { %v1748_v41 = vpop.xlane.xlu0 %1747 }
 0x6aa   : > { %3190 = vrcp.f32 %v1748_v41 }
 0x6ab   : > { %3192 = vrcp.f32 %v1751_v40 }
 0x6ac   : > { %v3154_v42 = vpop.permute.xlu1 %3153 }
 0x6ad   : > { %v3149_v43 = vpop.permute.xlu0 %3148  ;;  %v3156_v44 = vunpack.i.h.bf16 %v3154_v42  ;;  %v3155_v45 = vunpack.i.l.bf16 %v3154_v42 }
 0x6ae   : > { %v3151_v46 = vunpack.i.h.bf16 %v3149_v43  ;;  %v3150_v48 = vunpack.i.l.bf16 %v3149_v43  ;;  %v1989_v43 = vld [vmem:[%s3455_s0] sm:$0xff] }
 0x6af   : > { %v2970_v54 = vpack.c.bf16 %v3156_v44, %v3155_v45  ;;  %v1990_v44 = vld [vmem:[%s3455_s0 + $0x8] sm:$0xff] }
 0x6b0   : > { %v3159_v51 = vpop.permute.xlu1 %3158  ;;  %v2958_v52 = vpack.c.bf16 %v3151_v46, %v3150_v48  ;;  %v3008_v45 = vpack.c.bf16 %v1990_v44, %v1989_v43  ;;  %v1991_v46 = vld [vmem:[%s3455_s0 + $0x10] sm:$0xff]  ;;  %v1992_v48 = vld [vmem:[%s3455_s0 + $0x18] sm:$0xff] }
 0x6b1   : > { %v3161_v56 = vunpack.i.h.bf16 %v3159_v51  ;;  %v3160_v57 = vunpack.i.l.bf16 %v3159_v51  ;;  %v3012_v51 = vpack.c.bf16 %v1992_v48, %v1991_v46 }
 0x6b2   : > { %2960 = vmatprep.subr.msk.bf16.mxu0 %vm3613_vm0, %v2958_v52  ;;  %3009 = vmatprep.subr.bf16.mxu1 %v3008_v45 }
 0x6b3   : > { %2963 = vmatpush3.bf16.msk.msra.mxu0 %vm3613_vm0, %v2958_v52  ;;  %v2994_v63 = vpack.c.bf16 %v3161_v56, %v3160_v57  ;;  %3011 = vmatpush3.bf16.msra.mxu1 %v3008_v45  ;;  %v2083_v52 = vld [vmem:[%s3465_s13] sm:$0xff]  ;;  %v2086_v56 = vld [vmem:[%s3465_s13 + $0x18] sm:$0xff] }
 0x6b4   : > { %2972 = vmatprep.subr.msk.bf16.mxu0 %vm3613_vm0, %v2970_v54  ;;  %v3191_v62 = vpop.eup %3190  ;;  %3013 = vmatprep.subr.bf16.mxu1 %v3012_v51  ;;  %v3020_v57 = vpack.c.bf16 %v2086_v56, %v2085_v55 }
 0x6b5   : > { %v3193_v1 = vpop.eup %3192  ;;  %v1754_v2 = vmul.f32 %v3191_v62, %v3181_v32  ;;  %v2089_v62 = vld [vmem:[%s3465_s13 + $0x30] sm:$0xff] }
 0x6b6   : > { %2800 = vmatmul.mubr.msk.f32.vlgmr.msra.gmra.mrb[0].mxu0 %vm1101_vm13, %v1124_v58  ;;  %v1755_v4 = vmul.f32 %v3193_v1, %v3179_v31  ;;  %v2087_v58 = vld [vmem:[%s3465_s13 + $0x20] sm:$0xff] }
 0x6b7   : > { %2975 = vmatpush3.bf16.msk.msra.mxu0 %vm3613_vm0, %v2970_v54  ;;  %2813 = vmatprep.mubr.msk.f32.mxu0 %vm1101_vm13, %v1328_v60  ;;  %v3016_v54 = vpack.c.bf16 %v2084_v53, %v2083_v52  ;;  %v3024_v60 = vpack.c.bf16 %v2088_v59, %v2087_v58  ;;  %v2091_v1 = vld [vmem:[%s3465_s13 + $0x40] sm:$0xff] }
 0x6b8   : > { %2996 = vmatprep.subr.msk.bf16.mxu0 %vm3613_vm0, %v2994_v63  ;;  %3015 = vmatpush3.bf16.msra.mxu1 %v3012_v51 }
 0x6ba   : > { %2814 = vmatmul.mubr.msk.f32.vlgmr.msra.gmra.mrb[2].mxu0 %vm1101_vm13, %v1329_v0 }
 0x6bb   : > { %2999 = vmatpush3.bf16.msk.msra.mxu0 %vm3613_vm0, %v2994_v63  ;;  %2841 = vmatprep.mubr.msk.f32.mxu0 %vm1101_vm13, %v1754_v2  ;;  %v2090_v63 = vld [vmem:[%s3465_s13 + $0x38] sm:$0xff]  ;;  %v2092_v2 = vld [vmem:[%s3465_s13 + $0x48] sm:$0xff] }
 0x6bc   : > { %3001 = vmatprep.subr.bf16.mxu0 %v3000_v10  ;;  %v3028_v0 = vpack.c.bf16 %v2090_v63, %v2089_v62 }
 0x6be   : > { %2842 = vmatmul.mubr.msk.f32.vlgmr.msra.gmra.mrb[4].mxu0 %vm1101_vm13, %v1755_v4  ;;  %v3032_v4 = vpack.c.bf16 %v2092_v2, %v2091_v1  ;;  %v2208_v2 = vsub.s32 4, %v3681_v23 }
 0x6bf   : > { %3003 = vmatpush3.bf16.msra.mxu0 %v3000_v10  ;;  %v3040_v10 = vpack.c.bf16 %v2096_v9, %v2095_v61 }
 0x6c0   : > { %3005 = vmatprep.subr.bf16.mxu0 %v3004_v12 }
 0x6c3   : > { %3007 = vmatpush3.bf16.msra.mxu0 %v3004_v12 }
 0x6c4   : > { %3017 = vmatprep.subr.bf16.mxu0 %v3016_v54 }
 0x789   : > { %v2801_v5 = vpop.f32.mrb[0].mxu0 }
 0x78a   : > { %1216 = vst.msk [vmem:[#allocation4 + $0x8] sm:$0x1] %vm1215_vm1, %v2801_v5  ;;  %v1205_v7 = vpop.f32.mrb[1].mxu0  ;;  %v2093_v5 = vld [vmem:[%s3465_s13 + $0x50] sm:$0xff] }
 0x78b   : > { %1214 = vst.msk [vmem:[#allocation4] sm:$0xff] %vm1015_vm10, %v1205_v7  ;;  %v2094_v7 = vld [vmem:[%s3465_s13 + $0x58] sm:$0xff]  ;;  %vm3282_vm10 = vmmov (!%p2635_p13), 0  }
 0x78c   : > { %v3036_v8 = vpack.c.bf16 %v2094_v7, %v2093_v5  ;;  %v2209_v5 = vrot.slane %v3685_v25, %v2208_v2 }
 0x78d   : > { %v2815_v13 = vpop.f32.mrb[2].mxu0 }
 0x78e   : > { %1422 = vrot.lane.b32.xlu1 %v2815_v13, %s3278_s30  ;;  %v1409_v50 = vpop.f32.mrb[3].mxu0 }
 0x78f   : > { %1420 = vrot.lane.b32.xlu0 %v1409_v50, %s3278_s30  ;;  %s3860_s30 = sld [smem:[#allocation21_spill]] (!%p2635_p13) }
 0x791   : > { %v2843_v14 = vpop.f32.mrb[4].mxu0 }
 0x792   : > { %1635 = vrot.lane.b32.xlu1 %v3629_v3, %s3279_s1  ;;  %v1835_v16 = vpop.f32.mrb[5].mxu0 }
 0x793   : > { %1633 = vrot.lane.b32.xlu0 %v3631_v6, %s3279_s1 }
 0x796   : > { %1848 = vrot.lane.b32.xlu1 %v2843_v14, %s3280_s16 }
 0x797   : > { %1846 = vrot.lane.b32.xlu0 %v1835_v16, %s3280_s16 }
 0x800   : > { %v1423_v17 = vpop.permute.xlu1 %1422 }
 0x801   : > { %1429 = vst.msk [vmem:[#allocation4 + $0x8] sm:$0x1] %vm1428_vm2, %v1423_v17  ;;  %v1421_v18 = vpop.permute.xlu0 %1420  ;;  %v1979_v17 = vsub.s32 2, %v3681_v23 }
 0x802   : > { %1427 = vst.msk [vmem:[#allocation4] sm:$0xff] %vm1426_vm3, %v1421_v18  ;;  %v1985_v18 = vsub.s32 3, %v3681_v23 }
 0x804   : > { %v1636_v19 = vpop.permute.xlu1 %1635 }
 0x805   : > { %1642 = vst.msk [vmem:[#allocation4 + $0x8] sm:$0x1] %vm1641_vm4, %v1636_v19  ;;  %v1634_v20 = vpop.permute.xlu0 %1633  ;;  %v1980_v19 = vrot.slane %v3685_v25, %v1979_v17 }
 0x806   : > { %1640 = vst.msk [vmem:[#allocation4] sm:$0xff] %vm1639_vm5, %v1634_v20 }
 0x808   : > { %v1849_v3 = vpop.permute.xlu1 %1848 }
 0x809   : > { %1855 = vst.msk [vmem:[#allocation4 + $0x8] sm:$0x1] %vm1854_vm6, %v1849_v3  ;;  %v1847_v6 = vpop.permute.xlu0 %1846 }
 0x80a   : > { %1853 = vst.msk [vmem:[#allocation4] sm:$0xff] %vm1852_vm7, %v1847_v6  ;;  %v1986_v6 = vrot.slane %v3685_v25, %v1985_v18 }
 0x810   : > { %v1857_v22 = vld [vmem:[#allocation4 + $0x8] sm:$0x1] }
 0x811   : > { %v1856_v21 = vld [vmem:[#allocation4] sm:$0xff] }
 0x812   : > { %2852 = vmatprep.mubr.msk.f32.mxu0 %vm919_vm9, %v1856_v21 }
 0x813   : > { %2853 = vmatmul.mubr.msk.f32.vlgmr.msra.gmra.mrb[6].mxu0 %vm919_vm9, %v1857_v22 }
 0x814   : > { %3019 = vmatpush3.bf16.msra.mxu0 %v3016_v54 }
 0x815   : > { %3021 = vmatprep.subr.bf16.mxu0 %v3020_v57 }
 0x818   : > { %3023 = vmatpush3.bf16.msra.mxu0 %v3020_v57 }
 0x819   : > { %3025 = vmatprep.subr.bf16.mxu0 %v3024_v60 }
 0x81c   : > { %3027 = vmatpush3.bf16.msra.mxu0 %v3024_v60 }
 0x81d   : > { %3029 = vmatprep.subr.bf16.mxu0 %v3028_v0 }
 0x820   : > { %3031 = vmatpush3.bf16.msra.mxu0 %v3028_v0 }
 0x821   : > { %3033 = vmatprep.subr.bf16.mxu0 %v3032_v4 }
 0x824   : > { %3035 = vmatpush3.bf16.msra.mxu0 %v3032_v4  ;;  %v2214_v4 = vsub.s32 5, %v3681_v23 }
 0x825   : > { %3037 = vmatprep.subr.bf16.mxu0 %v3036_v8 }
 0x826   : > { %v2215_v61 = vrot.slane %v3685_v25, %v2214_v4 }
 0x828   : > { %3039 = vmatpush3.bf16.msra.mxu0 %v3036_v8 }
 0x829   : > { %3041 = vmatprep.subr.bf16.mxu0 %v3040_v10 }
 0x82c   : > { %3043 = vmatpush3.bf16.msra.mxu0 %v3040_v10 }
 0x8e6   : > { %v2854_v27 = vpop.f32.mrb[6].mxu0 }
 0x8e7   : > { %v1944_v28 = vadd.f32 %v2854_v27, %v1865_v26  ;;  %v1938_v29 = vpop.f32.mrb[7].mxu0 }
 0x8e8   : > { %v1939_v30 = vadd.f32 %v1938_v29, %v1865_v26  ;;  %v2098_v29 = vld [vmem:[%s3465_s13 + $0x78] sm:$0xff] }
 0x8e9   : > { %v1948_v31 = vadd.f32 %v1944_v28, %v3545_v49  ;;  %v2097_v28 = vld [vmem:[%s3465_s13 + $0x70] sm:$0xff]  ;;  %s3858_s13 = sld [smem:[#allocation22_spill]] (!%p2635_p13) }
 0x8ea   : > { %v1947_v32 = vadd.f32 %v1939_v30, %v3541_v47  ;;  %v3044_v30 = vpack.c.bf16 %v2098_v29, %v2097_v28 }
 0x8eb   : > { %v1953_v33 = vsel %vm1952_vm8, %v1948_v31, 0.0 }
 0x8ec   : > { %1954 = vadd.xlane.f32.xlu1 %v1953_v33  ;;  %v1949_v34 = vsel %vm919_vm9, %v1947_v32, 0.0  ;;  %3045 = vmatprep.subr.bf16.mxu0 %v3044_v30 }
 0x8ed   : > { %1950 = vadd.xlane.f32.xlu0 %v1949_v34  ;;  %3047 = vmatpush3.bf16.msra.mxu0 %v3044_v30 }
 0x979   : > { %v1955_v35 = vpop.xlane.xlu1 %1954 }
 0x97a   : > { %v1958_v36 = vmul.f32 0.03125, %v1955_v35  ;;  %v1951_v37 = vpop.xlane.xlu0 %1950 }
 0x97b   : > { %v1957_v38 = vmul.f32 0.03125, %v1951_v37 }
 0x97c   : > { %v3692_v39 = vsub.f32 %v1948_v31, %v1958_v36  ;;  %v2632_v31 = vld [vmem:[%s690_s22] ss:$0 sm:$0xff] }
 0x97d   : > { %v3694_v40 = vsub.f32 %v1947_v32, %v1957_v38  ;;  %v2101_v38 = vsub.s32 1, %v3681_v23 }
 0x97e   : > { %v1962_v41 = vmul.f32 %v3692_v39, %v3692_v39 }
 0x97f   : > { %v1961_v47 = vmul.f32 %v3694_v40, %v3694_v40 }
 0x980   : > { %v1966_v42 = vsel %vm1952_vm8, %v1962_v41, 0.0 }
 0x981   : > { %v1963_v49 = vsel %vm919_vm9, %v1961_v47, 0.0 }
 0x982   : > { %1964 = vadd.xlane.f32.xlu0 %v1963_v49 }
 0x986   : > { %1967 = vadd.xlane.f32.xlu0 %v1966_v42 }
 0xa0f   : > { %v1965_v11 = vpop.xlane.xlu0 %1964 }
 0xa10   : > { %v1969_v12 = vmul.f32 0.03125, %v1965_v11 }
 0xa12   : > { %v1971_v13 = vadd.f32 1e-05, %v1969_v12 }
 0xa13   : > { %v1968_v50 = vpop.xlane.xlu0 %1967 }
 0xa14   : > { %3194 = vrsqrt.f32 %v1971_v13  ;;  %v1970_v14 = vmul.f32 0.03125, %v1968_v50 }
 0xa16   : > { %v1972_v16 = vadd.f32 1e-05, %v1970_v14 }
 0xa18   : > { %3196 = vrsqrt.f32 %v1972_v16 }
 0xa1e   : > { %v3195_v20 = vpop.eup %3194 }
 0xa1f   : > { %v1975_v3 = vmul.f32 %v3195_v20, %v3694_v40  ;;  %v2250_v20 = vld [vmem:[%s3858_s13 + $0x8] sm:$0xff] (!%p2635_p13) }
 0xa21   : > { %v1981_v21 = vmul.f32 %v1980_v19, %v1975_v3  ;;  %v2251_v3 = vld [vmem:[%s3858_s13 + $0x10] sm:$0xff] (!%p2635_p13) }
 0xa22   : > { %v3197_v22 = vpop.eup %3196 }
 0xa23   : > { %v1976_v15 = vmul.f32 %v3197_v22, %v3692_v39  ;;  %v1987_v24 = vadd.f32 %v1986_v6, %v1981_v21  ;;  %v2102_v39 = vrot.slane %v3685_v25, %v2101_v38  ;;  %v2252_v22 = vld [vmem:[%s3858_s13 + $0x18] sm:$0xff] (!%p2635_p13)  ;;  %v2336_v38 = vld [vmem:[%s3859_s24 + $0x10] sm:$0xff] (!%p2635_p13) }
 0xa25   : > { %v1982_v26 = vmul.f32 %v1980_v19, %v1976_v15  ;;  %2863 = vmatprep.mubr.msk.f32.mxu1 %vm919_vm9, %v1987_v24  ;;  %v2249_v19 = vld [vmem:[%s3858_s13] sm:$0xff] (!%p2635_p13)  ;;  %v3283_v15 = vmov (!%p2635_p13), 0.0  }
 0xa26   : > { %v3049_v21 = vpack.c.bf16 (!%p2635_p13), %v2250_v20, %v2249_v19 }
 0xa27   : > { %v1988_v27 = vadd.f32 %v1986_v6, %v1982_v26  ;;  %v3281_v6 = vmov (!%p2635_p13), 0.0|0.0   ;;  %v2334_v26 = vld [vmem:[%s3859_s24] sm:$0xff] (!%p2635_p13) }
 0xa28   : > { %3048 = vmatprep.subr.bf16.mxu0 (!%p2635_p13), %v3281_v6  ;;  %3054 = vmatprep.subr.bf16.mxu1 (!%p2635_p13), %v3281_v6 }
 0xa29   : > { %2864 = vmatmul.mubr.msk.f32.vlgmr.msra.gmra.mrb[12].mxu1 %vm919_vm9, %v1988_v27 }
 0xa2a   : > { %2920 = vmatprep.mubr.msk.f32.mxu1 (!%p2635_p13), %vm3282_vm10, %v3283_v15 }
 0xafc   : > { %v2865_v32 = vpop.f32.mrb[12].mxu1 }
 0xafd   : > { %v2078_v33 = vadd.f32 %v2865_v32, %v2632_v31  ;;  %v2072_v34 = vpop.f32.mrb[13].mxu1 }
 0xafe   : > { %v2073_v35 = vadd.f32 %v2632_v31, %v2072_v34 }
 0xaff   : > { %v2082_v37 = vmax.f32 %v2078_v33, 0.0  ;;  %v2636_v33 = vld [vmem:[%s3860_s30] ss:$0 sm:$0xff] (!%p2635_p13) }
 0xb00   : > { %v2081_v36 = vmax.f32 %v2073_v35, 0.0  ;;  %v2637_v35 = vld [vmem:[%s3860_s30 + $0x1] ss:$0 sm:$0xff] (!%p2635_p13) }
 0xb02   : > { %2898 = vmatprep.mubr.f32.mxu0 %v2081_v36 }
 0xb03   : > { %2899 = vmatmul.mubr.f32.vlgmr.msra.gmra.mrb[8].mxu0 %v2082_v37 }
 0xb04   : > { %2909 = vmatprep.mubr.msk.f32.mxu0 (!%p2635_p13), %vm3282_vm10, %v3283_v15  ;;  %3050 = vmatpush3.bf16.msra.mxu0 (!%p2635_p13), %v3049_v21 }
 0xb05   : > { %3051 = vmatprep.subr.bf16.mxu0 (!%p2635_p13), %v3281_v6 }
 0xbd6   : > { %v2900_v40 = vpop.f32.mrb[8].mxu0 }
 0xbd7   : > { %v2175_v47 = vadd.f32 %v2900_v40, %v2102_v39  ;;  %v2169_v49 = vpop.f32.mrb[9].mxu0 }
 0xbd8   : > { %v2170_v41 = vadd.f32 %v2169_v49, %v2102_v39  ;;  %v2337_v39 = vld [vmem:[%s3859_s24 + $0x18] sm:$0xff] (!%p2635_p13) }
 0xbd9   : > { %v2179_v42 = vadd.f32 %v2175_v47, %v1988_v27  ;;  %v2335_v27 = vld [vmem:[%s3859_s24 + $0x8] sm:$0xff] (!%p2635_p13)  ;;  %v3058_v40 = vpack.c.bf16 (!%p2635_p13), %v2337_v39, %v2336_v38  ;;  %v2638_v47 = vld [vmem:[%s3861_s20] ss:$0 sm:$0xff] (!%p2635_p13) }
 0xbda   : > { %v2178_v43 = vadd.f32 %v2170_v41, %v1987_v24  ;;  %v3052_v24 = vpack.c.bf16 (!%p2635_p13), %v2252_v22, %v2251_v3  ;;  %v3055_v28 = vpack.c.bf16 (!%p2635_p13), %v2335_v27, %v2334_v26 }
 0xbdb   : > { %v2183_v44 = vsel %vm1952_vm8, %v2179_v42, 0.0 }
 0xbdc   : > { %2184 = vadd.xlane.f32.xlu0 %v2183_v44  ;;  %v2180_v45 = vsel %vm919_vm9, %v2178_v43, 0.0  ;;  %3053 = vmatpush3.bf16.msra.mxu0 (!%p2635_p13), %v3052_v24  ;;  %v2640_v44 = vld [vmem:[#allocation7] ss:$0 sm:$0xff] (!%p2635_p13) }
 0xbdd   : > { %2181 = vadd.xlane.f32.xlu1 %v2180_v45  ;;  %3056 = vmatpush3.bf16.msra.mxu1 (!%p2635_p13), %v3055_v28 }
 0xbde   : > { %3057 = vmatprep.subr.bf16.mxu1 (!%p2635_p13), %v3281_v6 }
 0xbe1   : > { %3059 = vmatpush3.bf16.msra.mxu1 (!%p2635_p13), %v3058_v40 }
 0xc69   : > { %v2185_v46 = vpop.xlane.xlu0 %2184 }
 0xc6a   : > { %v2187_v48 = vmul.f32 0.03125, %v2185_v46  ;;  %v2182_v51 = vpop.xlane.xlu1 %2181 }
 0xc6b   : > { %v2186_v52 = vmul.f32 0.03125, %v2182_v51 }
 0xc6c   : > { %v2189_v53 = vsub.f32 %v2179_v42, %v2187_v48 }
 0xc6d   : > { %v2188_v55 = vsub.f32 %v2178_v43, %v2186_v52 }
 0xc6e   : > { %v2191_v54 = vmul.f32 %v2189_v53, %v2189_v53 }
 0xc6f   : > { %v2190_v56 = vmul.f32 %v2188_v55, %v2188_v55 }
 0xc70   : > { %v2195_v57 = vsel %vm1952_vm8, %v2191_v54, 0.0 }
 0xc71   : > { %2196 = vadd.xlane.f32.xlu0 %v2195_v57  ;;  %v2192_v58 = vsel %vm919_vm9, %v2190_v56, 0.0 }
 0xc72   : > { %2193 = vadd.xlane.f32.xlu1 %v2192_v58 }
 0xcfe   : > { %v2197_v59 = vpop.xlane.xlu0 %2196 }
 0xcff   : > { %v2199_v60 = vmul.f32 0.03125, %v2197_v59  ;;  %v2194_v62 = vpop.xlane.xlu1 %2193 }
 0xd00   : > { %v2198_v63 = vmul.f32 0.03125, %v2194_v62 }
 0xd01   : > { %v2201_v0 = vadd.f32 1e-05, %v2199_v60 }
 0xd02   : > { %v2200_v1 = vadd.f32 1e-05, %v2198_v63 }
 0xd03   : > { %3198 = vrsqrt.f32 %v2201_v0 }
 0xd04   : > { %3200 = vrsqrt.f32 %v2200_v1 }
 0xd0d   : > { %v3199_v7 = vpop.eup %3198 }
 0xd0e   : > { %v3201_v8 = vpop.eup %3200  ;;  %v2205_v9 = vmul.f32 %v3199_v7, %v2189_v53 }
 0xd0f   : > { %v2204_v10 = vmul.f32 %v3201_v8, %v2188_v55  ;;  %2223 = sbr.rel (%p2635_p13) target bundleno = 4119 (0x1017), region = 96 }
 0xd10   : > { %v2211_v11 = vmul.f32 %v2209_v5, %v2205_v9 }
 0xd11   : > { %v2210_v12 = vmul.f32 %v2209_v5, %v2204_v10 }
 0xd12   : > { %v2217_v13 = vadd.f32 %v2215_v61, %v2211_v11 }
 0xd13   : > { %v2216_v50 = vadd.f32 %v2215_v61, %v2210_v12 }
 0xd14   : > { %2219 = vst.msk [vmem:[#allocation2 + $0x8] sm:$0x1] %vm1952_vm8, %v2217_v13 }
 0xd15   : > { %2218 = vst.msk [vmem:[#allocation2] sm:$0xff] %vm919_vm9, %v2216_v50  ;;  %v2226_v23 = vsel (!%p2635_p13), %vm919_vm9, %v2216_v50, 0.0 }
 0xd16   : > { %2227 = vadd.xlane.f32.xlu0 %v2226_v23 }
 0xda3   : > { %v2228_v14 = vpop.xlane.xlu0 %2227 }
 0xda4   : > { %v2229_v16 = vmul.f32 0.03125, %v2228_v14 }
 0xda6   : > { %v2230_v17 = vsub.f32 %v2216_v50, %v2229_v16 }
 0xda8   : > { %v2231_v25 = vmul.f32 %v2230_v17, %v2230_v17 }
 0xdaa   : > { %v2232_v18 = vsel %vm919_vm9, %v2231_v25, 0.0 }
 0xdab   : > { %2233 = vadd.xlane.f32.xlu0 %v2232_v18 }
 0xe38   : > { %v2234_v29 = vpop.xlane.xlu0 %2233 }
 0xe39   : > { %v2235_v30 = vmul.f32 0.03125, %v2234_v29 }
 0xe3b   : > { %v2236_v31 = vadd.f32 1e-05, %v2235_v30 }
 0xe3d   : > { %3202 = vrsqrt.f32 %v2236_v31 }
 0xe47   : > { %v3203_v32 = vpop.eup %3202 }
 0xe48   : > { %v2238_v34 = vmul.f32 %v3203_v32, %v2230_v17 }
 0xe4a   : > { %v2243_v36 = vmul.f32 %v2636_v33, %v2238_v34 }
 0xe4c   : > { %v2248_v37 = vadd.f32 %v2637_v35, %v2243_v36 }
 0xe4e   : > { %2910 = vmatmul.mubr.msk.f32.vlgmr.msra.gmra.mrb[0].mxu0 %vm919_vm9, %v2248_v37 }
 0xf21   : > { %v2329_v49 = vpop.f32.mrb[0].mxu0 }
 0xf22   : > { %v2330_v41 = vadd.f32 %v2638_v47, %v2329_v49  ;;  %v2911_v42 = vpop.f32.mrb[1].mxu0 }
 0xf24   : > { %v2333_v43 = vmax.f32 %v2330_v41, 0.0 }
 0xf26   : > { %2921 = vmatmul.mubr.msk.f32.vlgmr.msra.gmra.mrb[0].mxu1 %vm919_vm9, %v2333_v43 }
 0xff9   : > { %v2414_v45 = vpop.f32.mrb[0].mxu1 }
 0xffa   : > { %v2415_v46 = vadd.f32 %v2640_v44, %v2414_v45  ;;  %v2922_v48 = vpop.f32.mrb[1].mxu1 }
 0xffc   : > { %v2642_v51 = vmul.f32 -1.442695, %v2415_v46 }
 0xffe   : > { %3204 = vpow2.f32 %v2642_v51 }
0x1008   : > { %v3205_v52 = vpop.eup %3204 }
0x1009   : > { %v2421_v53 = vadd.f32 1.0, %v3205_v52 }
0x100b   : > { %3206 = vrcp.f32 %v2421_v53 }
0x1015   : > { %v3207_v55 = vpop.eup %3206 }
0x1016   : > { %2425 = vst.msk [vmem:[%s3476_s5] sm:$0xff] %vm2424_vm11, %v3207_v55 }
0x1017 PF: > { %s3862_s8 = sld [smem:[#allocation12_spill]]  ;;  %s3863_s20 = sld [smem:[#allocation10_spill]] }
0x1018   : > { %s3864_s21 = sld [smem:[#allocation11_spill]]  ;;  %s3865_s22 = sld [smem:[#allocation13_spill]] }
0x1019   : > { %s3866_s17 = sld [smem:[#allocation14_spill]] }
0x101d   : > { %s36_s2 = sadd.s32 1, %s3862_s8  }
0x101e   : > { %p33_p0 = scmp.ge.s32.totalorder %s36_s2, 6  }
0x1020   :  { %35 = sbr.rel (!%p33_p0) target bundleno = 26 (0x1a), region = 150 }

</bundles_post_ra>
